<compile_context>
chip_gen: v7x
topology: tpu7x:2x2x1
jax: 0.10.0
libtpu: 0.0.40
codegen_flags: <defaults>
</compile_context>

<pallas_src>
import math

import jax
import jax.numpy as jnp
from jax import lax
from jax.experimental import pallas as pl
from jax.experimental.pallas import tpu as pltpu

# ----------------------------- config ---------------------------------------
VOCAB_SIZE = 65
VOCAB_PAD = 128       # lane-dense head width; logits sliced back to 65 outside
N_EMBED = 64
N_HEADS = 4
BLOCK_SIZE = 16       # max sequence length
N_LAYERS = 2
LN_EPS = 1e-5
NEG_INF = -1e30       # finite mask value (avoids inf arithmetic on the VPU)


# --------------------------- in-kernel helpers -------------------------------
def _layer_norm(x, gamma, beta):
    # x: (T, C); gamma/beta: (1, C)
    mu = jnp.mean(x, axis=-1, keepdims=True)
    var = jnp.mean((x - mu) ** 2, axis=-1, keepdims=True)
    return (x - mu) * lax.rsqrt(var + LN_EPS) * gamma + beta


def _bf16(x):
    return x.astype(jnp.bfloat16)


# --------------------------- fused Pallas kernel -----------------------------
def minigpt_fused_kernel(
    idx_ref, tok_emb_ref, pos_emb_ref,
    ln1_g_ref, ln1_b_ref, wqkv_ref, bqkv_ref, wp_ref, bp_ref,
    ln2_g_ref, ln2_b_ref, w1_ref, b1_ref, w2_ref, b2_ref,
    lnf_g_ref, lnf_b_ref, wh_ref, bh_ref,
    out_ref,
):
    T = idx_ref.shape[1]
    V, C = tok_emb_ref.shape
    H = N_HEADS
    D = C // H
    L = ln1_g_ref.shape[0]
    scale = 1.0 / math.sqrt(D)

    # ---- token + position embedding (gather via one-hot matmul on the MXU) ----
    idx_s = idx_ref[...].reshape(T, 1)                                   # (T, 1)
    vocab_iota = lax.broadcasted_iota(jnp.int32, (T, V), 1)
    onehot = (idx_s == vocab_iota).astype(jnp.float32)                   # (T, V)
    x = jnp.dot(onehot, tok_emb_ref[...],
                preferred_element_type=jnp.float32) + pos_emb_ref[...]   # (T, C)

    # ---- causal mask, built once and reused by every layer / head ----
    row = lax.broadcasted_iota(jnp.int32, (T, T), 0)
    col = lax.broadcasted_iota(jnp.int32, (T, T), 1)
    causal = col <= row

    for l in range(L):
        # ---- ln1 + self-attention (fused QKV projection) ----
        h = _layer_norm(x, ln1_g_ref[l], ln1_b_ref[l])
        qkv = (jnp.dot(_bf16(h), wqkv_ref[l],
                       preferred_element_type=jnp.float32) + bqkv_ref[l])
        qkv16 = _bf16(qkv)                                               # (T, 3C)

        y_heads = []
        for hh in range(H):
            qh = qkv16[:, hh * D:(hh + 1) * D]                           # (T, D)
            kh = qkv16[:, C + hh * D:C + (hh + 1) * D]                   # (T, D)
            vh = qkv16[:, 2 * C + hh * D:2 * C + (hh + 1) * D]           # (T, D)
            # scores = qh @ kh^T  (2-D, head-batched by static loop; no 4-D
            # einsum relayouts)
            s = lax.dot_general(qh, kh, (((1,), (1,)), ((), ())),
                                preferred_element_type=jnp.float32) * scale
            s = jnp.where(causal, s, NEG_INF)
            s = s - jnp.max(s, axis=-1, keepdims=True)
            p = jnp.exp(s)
            p = p * pl.reciprocal(jnp.sum(p, axis=-1, keepdims=True),
                                  approx=True)
            # TODO(synk): attention dropout omitted (eval-mode identity).
            y_heads.append(jnp.dot(_bf16(p), vh,
                                   preferred_element_type=jnp.float32))
        y = jnp.concatenate(y_heads, axis=-1)                            # (T, C)
        y = jnp.dot(_bf16(y), wp_ref[l],
                    preferred_element_type=jnp.float32) + bp_ref[l]
        x = x + y

        # ---- ln2 + feed-forward ----
        h = _layer_norm(x, ln2_g_ref[l], ln2_b_ref[l])
        f = jnp.dot(_bf16(h), w1_ref[l],
                    preferred_element_type=jnp.float32) + b1_ref[l]
        f = jnp.maximum(f, 0.0)
        f = jnp.dot(_bf16(f), w2_ref[l],
                    preferred_element_type=jnp.float32) + b2_ref[l]
        # TODO(synk): feed-forward dropout omitted (eval-mode identity).
        x = x + f

    # ---- final LayerNorm + vocab head (lane-padded to VOCAB_PAD) ----
    h = _layer_norm(x, lnf_g_ref[...], lnf_b_ref[...])
    logits = jnp.dot(_bf16(h), wh_ref[...],
                     preferred_element_type=jnp.float32) + bh_ref[...]
    out_ref[...] = logits.reshape(1, T, VOCAB_PAD)


# ----------------------------- wrapper ---------------------------------------
def _replicated_spec(arr):
    """Full-array block, same block for every grid step (weights stay resident)."""
    zeros = (0,) * arr.ndim
    return pl.BlockSpec(arr.shape, lambda b, _z=zeros: _z)


@jax.jit
def minigpt_forward(idx, params):
    B, T = idx.shape
    idx3 = idx.reshape(B, T, 1)            # trailing axis -> idx lives on sublanes
    pos = params['pos_emb'][:T]

    weight_args = (
        params['tok_emb'], pos,
        params['ln1_g'], params['ln1_b'],
        params['wqkv'], params['bqkv'], params['wp'], params['bp'],
        params['ln2_g'], params['ln2_b'],
        params['w1'], params['b1'], params['w2'], params['b2'],
        params['lnf_g'], params['lnf_b'], params['wh'], params['bh'],
    )

    in_specs = ([pl.BlockSpec((1, T, 1), lambda b: (b, 0, 0))]
                + [_replicated_spec(a) for a in weight_args])
    out_spec = pl.BlockSpec((1, T, VOCAB_PAD), lambda b: (b, 0, 0))

    logits_pad = pl.pallas_call(
        minigpt_fused_kernel,
        out_shape=jax.ShapeDtypeStruct((B, T, VOCAB_PAD), jnp.float32),
        grid_spec=pltpu.PrefetchScalarGridSpec(
            num_scalar_prefetch=0,
            grid=(B,),
            in_specs=in_specs,
            out_specs=out_spec,
        ),
        compiler_params=pltpu.CompilerParams(
            dimension_semantics=("parallel",)),
    )(idx3, *weight_args)

    return logits_pad[:, :, :VOCAB_SIZE]


# ------------------------- parameter initialization --------------------------
def _linear_init(key, fan_in, fan_out):
    # PyTorch nn.Linear default: U(-1/sqrt(fan_in), 1/sqrt(fan_in)).
    # Stored pre-transposed as (in, out) so the kernel does x @ W + b.
    kw, kb = jax.random.split(key)
    bound = 1.0 / math.sqrt(fan_in)
    w = jax.random.uniform(kw, (fan_in, fan_out), jnp.float32, -bound, bound)
    b = jax.random.uniform(kb, (1, fan_out), jnp.float32, -bound, bound)
    return w, b


def init_params(key):
    keys = jax.random.split(key, 3 + N_LAYERS)
    params = {
        'tok_emb': jax.random.normal(keys[0], (VOCAB_SIZE, N_EMBED), jnp.float32),
        'pos_emb': jax.random.normal(keys[1], (BLOCK_SIZE, N_EMBED), jnp.float32),
    }

    ln1_g, ln1_b, ln2_g, ln2_b = [], [], [], []
    wqkv, bqkv, wp, bp, w1, b1, w2, b2 = ([] for _ in range(8))
    for l in range(N_LAYERS):
        bk = jax.random.split(keys[2 + l], 6)
        wq, bq_ = _linear_init(bk[0], N_EMBED, N_EMBED)
        wk, bk_ = _linear_init(bk[1], N_EMBED, N_EMBED)
        wv, bv_ = _linear_init(bk[2], N_EMBED, N_EMBED)
        wp_l, bp_l = _linear_init(bk[3], N_EMBED, N_EMBED)
        w1_l, b1_l = _linear_init(bk[4], N_EMBED, 4 * N_EMBED)
        w2_l, b2_l = _linear_init(bk[5], 4 * N_EMBED, N_EMBED)
        ln1_g.append(jnp.ones((1, N_EMBED), jnp.float32))
        ln1_b.append(jnp.zeros((1, N_EMBED), jnp.float32))
        ln2_g.append(jnp.ones((1, N_EMBED), jnp.float32))
        ln2_b.append(jnp.zeros((1, N_EMBED), jnp.float32))
        wqkv.append(jnp.concatenate([wq, wk, wv], axis=1))      # (C, 3C)
        bqkv.append(jnp.concatenate([bq_, bk_, bv_], axis=1))   # (1, 3C)
        wp.append(wp_l); bp.append(bp_l)
        w1.append(w1_l); b1.append(b1_l)
        w2.append(w2_l); b2.append(b2_l)

    # Stack per-layer weights along a leading (N_LAYERS, ...) axis.  Matmul
    # weights are stored in bf16 (MXU-native); LN params / biases stay f32.
    params.update(
        ln1_g=jnp.stack(ln1_g), ln1_b=jnp.stack(ln1_b),
        ln2_g=jnp.stack(ln2_g), ln2_b=jnp.stack(ln2_b),
        wqkv=jnp.stack(wqkv).astype(jnp.bfloat16), bqkv=jnp.stack(bqkv),
        wp=jnp.stack(wp).astype(jnp.bfloat16), bp=jnp.stack(bp),
        w1=jnp.stack(w1).astype(jnp.bfloat16), b1=jnp.stack(b1),
        w2=jnp.stack(w2).astype(jnp.bfloat16), b2=jnp.stack(b2),
    )

    params['lnf_g'] = jnp.ones((1, N_EMBED), jnp.float32)
    params['lnf_b'] = jnp.zeros((1, N_EMBED), jnp.float32)
    wh, bh = _linear_init(keys[2 + N_LAYERS], N_EMBED, VOCAB_SIZE)
    pad = VOCAB_PAD - VOCAB_SIZE
    params['wh'] = jnp.pad(wh, ((0, 0), (0, pad))).astype(jnp.bfloat16)
    params['bh'] = jnp.pad(bh, ((0, 0), (0, pad)))
    return params


# --------------------------------- main --------------------------------------
if __name__ == "__main__":
    key = jax.random.PRNGKey(0)
    k_params, k_idx = jax.random.split(key)

    params = init_params(k_params)

    B, T = 2, BLOCK_SIZE
    idx = jax.random.randint(k_idx, (B, T), 0, VOCAB_SIZE, dtype=jnp.int32)

    logits = minigpt_forward(idx, params)
    jax.block_until_ready(logits)

    assert logits.shape == (B, T, VOCAB_SIZE), logits.shape
    assert bool(jnp.all(jnp.isfinite(logits)))
    print("KERNEL_OK")
</pallas_src>

<mosaic_0001>
module attributes {stable_mosaic.version = 11 : i64} {
  func.func @minigpt_fused_kernel(%arg0: i32, %arg1: memref<1x16x1xi32, #tpu.memory_space<vmem>>, %arg2: memref<65x64xf32, #tpu.memory_space<vmem>>, %arg3: memref<16x64xf32, #tpu.memory_space<vmem>>, %arg4: memref<2x1x64xf32, #tpu.memory_space<vmem>>, %arg5: memref<2x1x64xf32, #tpu.memory_space<vmem>>, %arg6: memref<2x64x192xbf16, #tpu.memory_space<vmem>>, %arg7: memref<2x1x192xf32, #tpu.memory_space<vmem>>, %arg8: memref<2x64x64xbf16, #tpu.memory_space<vmem>>, %arg9: memref<2x1x64xf32, #tpu.memory_space<vmem>>, %arg10: memref<2x1x64xf32, #tpu.memory_space<vmem>>, %arg11: memref<2x1x64xf32, #tpu.memory_space<vmem>>, %arg12: memref<2x64x256xbf16, #tpu.memory_space<vmem>>, %arg13: memref<2x1x256xf32, #tpu.memory_space<vmem>>, %arg14: memref<2x256x64xbf16, #tpu.memory_space<vmem>>, %arg15: memref<2x1x64xf32, #tpu.memory_space<vmem>>, %arg16: memref<1x64xf32, #tpu.memory_space<vmem>>, %arg17: memref<1x64xf32, #tpu.memory_space<vmem>>, %arg18: memref<64x128xbf16, #tpu.memory_space<vmem>>, %arg19: memref<1x128xf32, #tpu.memory_space<vmem>>, %arg20: memref<1x16x128xf32, #tpu.memory_space<vmem>>) attributes {dimension_semantics = [#tpu.dimension_semantics<parallel>], iteration_bounds = array<i64: 2>, scalar_prefetch = 0 : i64, scratch_operands = 0 : i64, tpu.core_type = #tpu.core_type<tc>, window_params = [{transform_indices = @transform_0, window_bounds = array<i64: 1, 16, 1>}, {pipeline_mode = #tpu.pipeline_mode<synchronous>, transform_indices = @transform_1, window_bounds = array<i64: 65, 64>}, {pipeline_mode = #tpu.pipeline_mode<synchronous>, transform_indices = @transform_2, window_bounds = array<i64: 16, 64>}, {pipeline_mode = #tpu.pipeline_mode<synchronous>, transform_indices = @transform_3, window_bounds = array<i64: 2, 1, 64>}, {pipeline_mode = #tpu.pipeline_mode<synchronous>, transform_indices = @transform_4, window_bounds = array<i64: 2, 1, 64>}, {pipeline_mode = #tpu.pipeline_mode<synchronous>, transform_indices = @transform_5, window_bounds = array<i64: 2, 64, 192>}, {pipeline_mode = #tpu.pipeline_mode<synchronous>, transform_indices = @transform_6, window_bounds = array<i64: 2, 1, 192>}, {pipeline_mode = #tpu.pipeline_mode<synchronous>, transform_indices = @transform_7, window_bounds = array<i64: 2, 64, 64>}, {pipeline_mode = #tpu.pipeline_mode<synchronous>, transform_indices = @transform_8, window_bounds = array<i64: 2, 1, 64>}, {pipeline_mode = #tpu.pipeline_mode<synchronous>, transform_indices = @transform_9, window_bounds = array<i64: 2, 1, 64>}, {pipeline_mode = #tpu.pipeline_mode<synchronous>, transform_indices = @transform_10, window_bounds = array<i64: 2, 1, 64>}, {pipeline_mode = #tpu.pipeline_mode<synchronous>, transform_indices = @transform_11, window_bounds = array<i64: 2, 64, 256>}, {pipeline_mode = #tpu.pipeline_mode<synchronous>, transform_indices = @transform_12, window_bounds = array<i64: 2, 1, 256>}, {pipeline_mode = #tpu.pipeline_mode<synchronous>, transform_indices = @transform_13, window_bounds = array<i64: 2, 256, 64>}, {pipeline_mode = #tpu.pipeline_mode<synchronous>, transform_indices = @transform_14, window_bounds = array<i64: 2, 1, 64>}, {pipeline_mode = #tpu.pipeline_mode<synchronous>, transform_indices = @transform_15, window_bounds = array<i64: 1, 64>}, {pipeline_mode = #tpu.pipeline_mode<synchronous>, transform_indices = @transform_16, window_bounds = array<i64: 1, 64>}, {pipeline_mode = #tpu.pipeline_mode<synchronous>, transform_indices = @transform_17, window_bounds = array<i64: 64, 128>}, {pipeline_mode = #tpu.pipeline_mode<synchronous>, transform_indices = @transform_18, window_bounds = array<i64: 1, 128>}, {transform_indices = @transform_19, window_bounds = array<i64: 1, 16, 128>}]} {
    %c0 = arith.constant 0 : index
    %c0_0 = arith.constant 0 : index
    %c0_1 = arith.constant 0 : index
    %0 = vector.load %arg1[%c0, %c0_0, %c0_1] : memref<1x16x1xi32, #tpu.memory_space<vmem>>, vector<1x16x1xi32>
    %1 = vector.shape_cast %0 : vector<1x16x1xi32> to vector<16x1xi32>
    %2 = tpu.iota {dimensions = array<i32: 1>} : vector<16x65xi32>
    %3 = vector.broadcast %1 : vector<16x1xi32> to vector<16x65xi32>
    %4 = arith.cmpi eq, %3, %2 : vector<16x65xi32>
    %5 = arith.extui %4 : vector<16x65xi1> to vector<16x65xi32>
    %6 = arith.sitofp %5 : vector<16x65xi32> to vector<16x65xf32>
    %c0_2 = arith.constant 0 : index
    %c0_3 = arith.constant 0 : index
    %7 = vector.load %arg2[%c0_2, %c0_3] : memref<65x64xf32, #tpu.memory_space<vmem>>, vector<65x64xf32>
    %cst = arith.constant dense<0.000000e+00> : vector<16x64xf32>
    %8 = tpu.matmul %6, %7, %cst {dimension_numbers = #tpu.dot_dimension_numbers<[1], [0], [0], [1], [0, 0, 1, 1], [], []>} : vector<16x65xf32>, vector<65x64xf32>, vector<16x64xf32> -> vector<16x64xf32>
    %c0_4 = arith.constant 0 : index
    %c0_5 = arith.constant 0 : index
    %9 = vector.load %arg3[%c0_4, %c0_5] : memref<16x64xf32, #tpu.memory_space<vmem>>, vector<16x64xf32>
    %10 = arith.addf %8, %9 : vector<16x64xf32>
    %11 = tpu.iota {dimensions = array<i32: 0>} : vector<16x16xi32>
    %12 = tpu.iota {dimensions = array<i32: 1>} : vector<16x16xi32>
    %13 = arith.cmpi sle, %12, %11 : vector<16x16xi32>
    %c0_6 = arith.constant 0 : index
    %c0_7 = arith.constant 0 : index
    %c0_8 = arith.constant 0 : index
    %14 = vector.load %arg4[%c0_6, %c0_7, %c0_8] : memref<2x1x64xf32, #tpu.memory_space<vmem>>, vector<1x1x64xf32>
    %15 = vector.shape_cast %14 : vector<1x1x64xf32> to vector<1x64xf32>
    %c0_9 = arith.constant 0 : index
    %c0_10 = arith.constant 0 : index
    %c0_11 = arith.constant 0 : index
    %16 = vector.load %arg5[%c0_9, %c0_10, %c0_11] : memref<2x1x64xf32, #tpu.memory_space<vmem>>, vector<1x1x64xf32>
    %17 = vector.shape_cast %16 : vector<1x1x64xf32> to vector<1x64xf32>
    %cst_12 = arith.constant dense<0.000000e+00> : vector<16xf32>
    %18 = vector.multi_reduction <add>, %10, %cst_12 [1] : vector<16x64xf32> to vector<16xf32>
    %19 = vector.shape_cast %18 : vector<16xf32> to vector<16x1xf32>
    %cst_13 = arith.constant 6.400000e+01 : f32
    %20 = vector.broadcast %cst_13 : f32 to vector<16x1xf32>
    %21 = arith.divf %19, %20 : vector<16x1xf32>
    %22 = vector.broadcast %21 : vector<16x1xf32> to vector<16x64xf32>
    %23 = arith.subf %10, %22 : vector<16x64xf32>
    %24 = arith.mulf %23, %23 : vector<16x64xf32>
    %cst_14 = arith.constant dense<0.000000e+00> : vector<16xf32>
    %25 = vector.multi_reduction <add>, %24, %cst_14 [1] : vector<16x64xf32> to vector<16xf32>
    %26 = vector.shape_cast %25 : vector<16xf32> to vector<16x1xf32>
    %cst_15 = arith.constant 6.400000e+01 : f32
    %27 = vector.broadcast %cst_15 : f32 to vector<16x1xf32>
    %28 = arith.divf %26, %27 : vector<16x1xf32>
    %29 = vector.broadcast %21 : vector<16x1xf32> to vector<16x64xf32>
    %30 = arith.subf %10, %29 : vector<16x64xf32>
    %cst_16 = arith.constant 9.99999974E-6 : f32
    %31 = vector.broadcast %cst_16 : f32 to vector<16x1xf32>
    %32 = arith.addf %28, %31 : vector<16x1xf32>
    %33 = math.rsqrt %32 : vector<16x1xf32>
    %34 = vector.broadcast %33 : vector<16x1xf32> to vector<16x64xf32>
    %35 = arith.mulf %30, %34 : vector<16x64xf32>
    %36 = vector.broadcast %15 : vector<1x64xf32> to vector<16x64xf32>
    %37 = arith.mulf %35, %36 : vector<16x64xf32>
    %38 = vector.broadcast %17 : vector<1x64xf32> to vector<16x64xf32>
    %39 = arith.addf %37, %38 : vector<16x64xf32>
    %40 = arith.truncf %39 : vector<16x64xf32> to vector<16x64xbf16>
    %c0_17 = arith.constant 0 : index
    %c0_18 = arith.constant 0 : index
    %c0_19 = arith.constant 0 : index
    %41 = vector.load %arg6[%c0_17, %c0_18, %c0_19] : memref<2x64x192xbf16, #tpu.memory_space<vmem>>, vector<1x64x192xbf16>
    %42 = vector.shape_cast %41 : vector<1x64x192xbf16> to vector<64x192xbf16>
    %cst_20 = arith.constant dense<0.000000e+00> : vector<16x192xf32>
    %43 = tpu.matmul %40, %42, %cst_20 {dimension_numbers = #tpu.dot_dimension_numbers<[1], [0], [0], [1], [0, 0, 1, 1], [], []>} : vector<16x64xbf16>, vector<64x192xbf16>, vector<16x192xf32> -> vector<16x192xf32>
    %c0_21 = arith.constant 0 : index
    %c0_22 = arith.constant 0 : index
    %c0_23 = arith.constant 0 : index
    %44 = vector.load %arg7[%c0_21, %c0_22, %c0_23] : memref<2x1x192xf32, #tpu.memory_space<vmem>>, vector<1x1x192xf32>
    %45 = vector.shape_cast %44 : vector<1x1x192xf32> to vector<1x192xf32>
    %46 = vector.broadcast %45 : vector<1x192xf32> to vector<16x192xf32>
    %47 = arith.addf %43, %46 : vector<16x192xf32>
    %48 = arith.truncf %47 : vector<16x192xf32> to vector<16x192xbf16>
    %49 = vector.extract_strided_slice %48 {offsets = [0, 0], sizes = [16, 16], strides = [1, 1]} : vector<16x192xbf16> to vector<16x16xbf16>
    %50 = vector.extract_strided_slice %48 {offsets = [0, 64], sizes = [16, 16], strides = [1, 1]} : vector<16x192xbf16> to vector<16x16xbf16>
    %51 = vector.extract_strided_slice %48 {offsets = [0, 128], sizes = [16, 16], strides = [1, 1]} : vector<16x192xbf16> to vector<16x16xbf16>
    %cst_24 = arith.constant dense<0.000000e+00> : vector<16x16xf32>
    %52 = tpu.matmul %49, %50, %cst_24 {dimension_numbers = #tpu.dot_dimension_numbers<[1], [1], [0], [0], [0, 0, 1, 0], [], []>} : vector<16x16xbf16>, vector<16x16xbf16>, vector<16x16xf32> -> vector<16x16xf32>
    %cst_25 = arith.constant 2.500000e-01 : f32
    %53 = vector.broadcast %cst_25 : f32 to vector<16x16xf32>
    %54 = arith.mulf %52, %53 : vector<16x16xf32>
    %cst_26 = arith.constant -1.000000e+30 : f32
    %55 = vector.broadcast %cst_26 : f32 to vector<16x16xf32>
    %56 = arith.select %13, %54, %55 : vector<16x16xi1>, vector<16x16xf32>
    %cst_27 = arith.constant dense<0xFF800000> : vector<16xf32>
    %57 = vector.multi_reduction <maximumf>, %56, %cst_27 [1] : vector<16x16xf32> to vector<16xf32>
    %58 = vector.shape_cast %57 : vector<16xf32> to vector<16x1xf32>
    %59 = vector.broadcast %58 : vector<16x1xf32> to vector<16x16xf32>
    %60 = arith.subf %56, %59 : vector<16x16xf32>
    %61 = math.exp %60 : vector<16x16xf32>
    %cst_28 = arith.constant dense<0.000000e+00> : vector<16xf32>
    %62 = vector.multi_reduction <add>, %61, %cst_28 [1] : vector<16x16xf32> to vector<16xf32>
    %63 = vector.shape_cast %62 : vector<16xf32> to vector<16x1xf32>
    %64 = tpu.reciprocal %63 {approx = true} : vector<16x1xf32> -> vector<16x1xf32>
    %65 = vector.broadcast %64 : vector<16x1xf32> to vector<16x16xf32>
    %66 = arith.mulf %61, %65 : vector<16x16xf32>
    %67 = arith.truncf %66 : vector<16x16xf32> to vector<16x16xbf16>
    %cst_29 = arith.constant dense<0.000000e+00> : vector<16x16xf32>
    %68 = tpu.matmul %67, %51, %cst_29 {dimension_numbers = #tpu.dot_dimension_numbers<[1], [0], [0], [1], [0, 0, 1, 1], [], []>} : vector<16x16xbf16>, vector<16x16xbf16>, vector<16x16xf32> -> vector<16x16xf32>
    %69 = vector.extract_strided_slice %48 {offsets = [0, 16], sizes = [16, 16], strides = [1, 1]} : vector<16x192xbf16> to vector<16x16xbf16>
    %70 = vector.extract_strided_slice %48 {offsets = [0, 80], sizes = [16, 16], strides = [1, 1]} : vector<16x192xbf16> to vector<16x16xbf16>
    %71 = vector.extract_strided_slice %48 {offsets = [0, 144], sizes = [16, 16], strides = [1, 1]} : vector<16x192xbf16> to vector<16x16xbf16>
    %cst_30 = arith.constant dense<0.000000e+00> : vector<16x16xf32>
    %72 = tpu.matmul %69, %70, %cst_30 {dimension_numbers = #tpu.dot_dimension_numbers<[1], [1], [0], [0], [0, 0, 1, 0], [], []>} : vector<16x16xbf16>, vector<16x16xbf16>, vector<16x16xf32> -> vector<16x16xf32>
    %cst_31 = arith.constant 2.500000e-01 : f32
    %73 = vector.broadcast %cst_31 : f32 to vector<16x16xf32>
    %74 = arith.mulf %72, %73 : vector<16x16xf32>
    %cst_32 = arith.constant -1.000000e+30 : f32
    %75 = vector.broadcast %cst_32 : f32 to vector<16x16xf32>
    %76 = arith.select %13, %74, %75 : vector<16x16xi1>, vector<16x16xf32>
    %cst_33 = arith.constant dense<0xFF800000> : vector<16xf32>
    %77 = vector.multi_reduction <maximumf>, %76, %cst_33 [1] : vector<16x16xf32> to vector<16xf32>
    %78 = vector.shape_cast %77 : vector<16xf32> to vector<16x1xf32>
    %79 = vector.broadcast %78 : vector<16x1xf32> to vector<16x16xf32>
    %80 = arith.subf %76, %79 : vector<16x16xf32>
    %81 = math.exp %80 : vector<16x16xf32>
    %cst_34 = arith.constant dense<0.000000e+00> : vector<16xf32>
    %82 = vector.multi_reduction <add>, %81, %cst_34 [1] : vector<16x16xf32> to vector<16xf32>
    %83 = vector.shape_cast %82 : vector<16xf32> to vector<16x1xf32>
    %84 = tpu.reciprocal %83 {approx = true} : vector<16x1xf32> -> vector<16x1xf32>
    %85 = vector.broadcast %84 : vector<16x1xf32> to vector<16x16xf32>
    %86 = arith.mulf %81, %85 : vector<16x16xf32>
    %87 = arith.truncf %86 : vector<16x16xf32> to vector<16x16xbf16>
    %cst_35 = arith.constant dense<0.000000e+00> : vector<16x16xf32>
    %88 = tpu.matmul %87, %71, %cst_35 {dimension_numbers = #tpu.dot_dimension_numbers<[1], [0], [0], [1], [0, 0, 1, 1], [], []>} : vector<16x16xbf16>, vector<16x16xbf16>, vector<16x16xf32> -> vector<16x16xf32>
    %89 = vector.extract_strided_slice %48 {offsets = [0, 32], sizes = [16, 16], strides = [1, 1]} : vector<16x192xbf16> to vector<16x16xbf16>
    %90 = vector.extract_strided_slice %48 {offsets = [0, 96], sizes = [16, 16], strides = [1, 1]} : vector<16x192xbf16> to vector<16x16xbf16>
    %91 = vector.extract_strided_slice %48 {offsets = [0, 160], sizes = [16, 16], strides = [1, 1]} : vector<16x192xbf16> to vector<16x16xbf16>
    %cst_36 = arith.constant dense<0.000000e+00> : vector<16x16xf32>
    %92 = tpu.matmul %89, %90, %cst_36 {dimension_numbers = #tpu.dot_dimension_numbers<[1], [1], [0], [0], [0, 0, 1, 0], [], []>} : vector<16x16xbf16>, vector<16x16xbf16>, vector<16x16xf32> -> vector<16x16xf32>
    %cst_37 = arith.constant 2.500000e-01 : f32
    %93 = vector.broadcast %cst_37 : f32 to vector<16x16xf32>
    %94 = arith.mulf %92, %93 : vector<16x16xf32>
    %cst_38 = arith.constant -1.000000e+30 : f32
    %95 = vector.broadcast %cst_38 : f32 to vector<16x16xf32>
    %96 = arith.select %13, %94, %95 : vector<16x16xi1>, vector<16x16xf32>
    %cst_39 = arith.constant dense<0xFF800000> : vector<16xf32>
    %97 = vector.multi_reduction <maximumf>, %96, %cst_39 [1] : vector<16x16xf32> to vector<16xf32>
    %98 = vector.shape_cast %97 : vector<16xf32> to vector<16x1xf32>
    %99 = vector.broadcast %98 : vector<16x1xf32> to vector<16x16xf32>
    %100 = arith.subf %96, %99 : vector<16x16xf32>
    %101 = math.exp %100 : vector<16x16xf32>
    %cst_40 = arith.constant dense<0.000000e+00> : vector<16xf32>
    %102 = vector.multi_reduction <add>, %101, %cst_40 [1] : vector<16x16xf32> to vector<16xf32>
    %103 = vector.shape_cast %102 : vector<16xf32> to vector<16x1xf32>
    %104 = tpu.reciprocal %103 {approx = true} : vector<16x1xf32> -> vector<16x1xf32>
    %105 = vector.broadcast %104 : vector<16x1xf32> to vector<16x16xf32>
    %106 = arith.mulf %101, %105 : vector<16x16xf32>
    %107 = arith.truncf %106 : vector<16x16xf32> to vector<16x16xbf16>
    %cst_41 = arith.constant dense<0.000000e+00> : vector<16x16xf32>
    %108 = tpu.matmul %107, %91, %cst_41 {dimension_numbers = #tpu.dot_dimension_numbers<[1], [0], [0], [1], [0, 0, 1, 1], [], []>} : vector<16x16xbf16>, vector<16x16xbf16>, vector<16x16xf32> -> vector<16x16xf32>
    %109 = vector.extract_strided_slice %48 {offsets = [0, 48], sizes = [16, 16], strides = [1, 1]} : vector<16x192xbf16> to vector<16x16xbf16>
    %110 = vector.extract_strided_slice %48 {offsets = [0, 112], sizes = [16, 16], strides = [1, 1]} : vector<16x192xbf16> to vector<16x16xbf16>
    %111 = vector.extract_strided_slice %48 {offsets = [0, 176], sizes = [16, 16], strides = [1, 1]} : vector<16x192xbf16> to vector<16x16xbf16>
    %cst_42 = arith.constant dense<0.000000e+00> : vector<16x16xf32>
    %112 = tpu.matmul %109, %110, %cst_42 {dimension_numbers = #tpu.dot_dimension_numbers<[1], [1], [0], [0], [0, 0, 1, 0], [], []>} : vector<16x16xbf16>, vector<16x16xbf16>, vector<16x16xf32> -> vector<16x16xf32>
    %cst_43 = arith.constant 2.500000e-01 : f32
    %113 = vector.broadcast %cst_43 : f32 to vector<16x16xf32>
    %114 = arith.mulf %112, %113 : vector<16x16xf32>
    %cst_44 = arith.constant -1.000000e+30 : f32
    %115 = vector.broadcast %cst_44 : f32 to vector<16x16xf32>
    %116 = arith.select %13, %114, %115 : vector<16x16xi1>, vector<16x16xf32>
    %cst_45 = arith.constant dense<0xFF800000> : vector<16xf32>
    %117 = vector.multi_reduction <maximumf>, %116, %cst_45 [1] : vector<16x16xf32> to vector<16xf32>
    %118 = vector.shape_cast %117 : vector<16xf32> to vector<16x1xf32>
    %119 = vector.broadcast %118 : vector<16x1xf32> to vector<16x16xf32>
    %120 = arith.subf %116, %119 : vector<16x16xf32>
    %121 = math.exp %120 : vector<16x16xf32>
    %cst_46 = arith.constant dense<0.000000e+00> : vector<16xf32>
    %122 = vector.multi_reduction <add>, %121, %cst_46 [1] : vector<16x16xf32> to vector<16xf32>
    %123 = vector.shape_cast %122 : vector<16xf32> to vector<16x1xf32>
    %124 = tpu.reciprocal %123 {approx = true} : vector<16x1xf32> -> vector<16x1xf32>
    %125 = vector.broadcast %124 : vector<16x1xf32> to vector<16x16xf32>
    %126 = arith.mulf %121, %125 : vector<16x16xf32>
    %127 = arith.truncf %126 : vector<16x16xf32> to vector<16x16xbf16>
    %cst_47 = arith.constant dense<0.000000e+00> : vector<16x16xf32>
    %128 = tpu.matmul %127, %111, %cst_47 {dimension_numbers = #tpu.dot_dimension_numbers<[1], [0], [0], [1], [0, 0, 1, 1], [], []>} : vector<16x16xbf16>, vector<16x16xbf16>, vector<16x16xf32> -> vector<16x16xf32>
    %129 = tpu.concatenate %68, %88, %108, %128 in 1 : vector<16x16xf32>, vector<16x16xf32>, vector<16x16xf32>, vector<16x16xf32> -> vector<16x64xf32>
    %130 = arith.truncf %129 : vector<16x64xf32> to vector<16x64xbf16>
    %c0_48 = arith.constant 0 : index
    %c0_49 = arith.constant 0 : index
    %c0_50 = arith.constant 0 : index
    %131 = vector.load %arg8[%c0_48, %c0_49, %c0_50] : memref<2x64x64xbf16, #tpu.memory_space<vmem>>, vector<1x64x64xbf16>
    %132 = vector.shape_cast %131 : vector<1x64x64xbf16> to vector<64x64xbf16>
    %cst_51 = arith.constant dense<0.000000e+00> : vector<16x64xf32>
    %133 = tpu.matmul %130, %132, %cst_51 {dimension_numbers = #tpu.dot_dimension_numbers<[1], [0], [0], [1], [0, 0, 1, 1], [], []>} : vector<16x64xbf16>, vector<64x64xbf16>, vector<16x64xf32> -> vector<16x64xf32>
    %c0_52 = arith.constant 0 : index
    %c0_53 = arith.constant 0 : index
    %c0_54 = arith.constant 0 : index
    %134 = vector.load %arg9[%c0_52, %c0_53, %c0_54] : memref<2x1x64xf32, #tpu.memory_space<vmem>>, vector<1x1x64xf32>
    %135 = vector.shape_cast %134 : vector<1x1x64xf32> to vector<1x64xf32>
    %136 = vector.broadcast %135 : vector<1x64xf32> to vector<16x64xf32>
    %137 = arith.addf %133, %136 : vector<16x64xf32>
    %138 = arith.addf %10, %137 : vector<16x64xf32>
    %c0_55 = arith.constant 0 : index
    %c0_56 = arith.constant 0 : index
    %c0_57 = arith.constant 0 : index
    %139 = vector.load %arg10[%c0_55, %c0_56, %c0_57] : memref<2x1x64xf32, #tpu.memory_space<vmem>>, vector<1x1x64xf32>
    %140 = vector.shape_cast %139 : vector<1x1x64xf32> to vector<1x64xf32>
    %c0_58 = arith.constant 0 : index
    %c0_59 = arith.constant 0 : index
    %c0_60 = arith.constant 0 : index
    %141 = vector.load %arg11[%c0_58, %c0_59, %c0_60] : memref<2x1x64xf32, #tpu.memory_space<vmem>>, vector<1x1x64xf32>
    %142 = vector.shape_cast %141 : vector<1x1x64xf32> to vector<1x64xf32>
    %cst_61 = arith.constant dense<0.000000e+00> : vector<16xf32>
    %143 = vector.multi_reduction <add>, %138, %cst_61 [1] : vector<16x64xf32> to vector<16xf32>
    %144 = vector.shape_cast %143 : vector<16xf32> to vector<16x1xf32>
    %cst_62 = arith.constant 6.400000e+01 : f32
    %145 = vector.broadcast %cst_62 : f32 to vector<16x1xf32>
    %146 = arith.divf %144, %145 : vector<16x1xf32>
    %147 = vector.broadcast %146 : vector<16x1xf32> to vector<16x64xf32>
    %148 = arith.subf %138, %147 : vector<16x64xf32>
    %149 = arith.mulf %148, %148 : vector<16x64xf32>
    %cst_63 = arith.constant dense<0.000000e+00> : vector<16xf32>
    %150 = vector.multi_reduction <add>, %149, %cst_63 [1] : vector<16x64xf32> to vector<16xf32>
    %151 = vector.shape_cast %150 : vector<16xf32> to vector<16x1xf32>
    %cst_64 = arith.constant 6.400000e+01 : f32
    %152 = vector.broadcast %cst_64 : f32 to vector<16x1xf32>
    %153 = arith.divf %151, %152 : vector<16x1xf32>
    %154 = vector.broadcast %146 : vector<16x1xf32> to vector<16x64xf32>
    %155 = arith.subf %138, %154 : vector<16x64xf32>
    %cst_65 = arith.constant 9.99999974E-6 : f32
    %156 = vector.broadcast %cst_65 : f32 to vector<16x1xf32>
    %157 = arith.addf %153, %156 : vector<16x1xf32>
    %158 = math.rsqrt %157 : vector<16x1xf32>
    %159 = vector.broadcast %158 : vector<16x1xf32> to vector<16x64xf32>
    %160 = arith.mulf %155, %159 : vector<16x64xf32>
    %161 = vector.broadcast %140 : vector<1x64xf32> to vector<16x64xf32>
    %162 = arith.mulf %160, %161 : vector<16x64xf32>
    %163 = vector.broadcast %142 : vector<1x64xf32> to vector<16x64xf32>
    %164 = arith.addf %162, %163 : vector<16x64xf32>
    %165 = arith.truncf %164 : vector<16x64xf32> to vector<16x64xbf16>
    %c0_66 = arith.constant 0 : index
    %c0_67 = arith.constant 0 : index
    %c0_68 = arith.constant 0 : index
    %166 = vector.load %arg12[%c0_66, %c0_67, %c0_68] : memref<2x64x256xbf16, #tpu.memory_space<vmem>>, vector<1x64x256xbf16>
    %167 = vector.shape_cast %166 : vector<1x64x256xbf16> to vector<64x256xbf16>
    %cst_69 = arith.constant dense<0.000000e+00> : vector<16x256xf32>
    %168 = tpu.matmul %165, %167, %cst_69 {dimension_numbers = #tpu.dot_dimension_numbers<[1], [0], [0], [1], [0, 0, 1, 1], [], []>} : vector<16x64xbf16>, vector<64x256xbf16>, vector<16x256xf32> -> vector<16x256xf32>
    %c0_70 = arith.constant 0 : index
    %c0_71 = arith.constant 0 : index
    %c0_72 = arith.constant 0 : index
    %169 = vector.load %arg13[%c0_70, %c0_71, %c0_72] : memref<2x1x256xf32, #tpu.memory_space<vmem>>, vector<1x1x256xf32>
    %170 = vector.shape_cast %169 : vector<1x1x256xf32> to vector<1x256xf32>
    %171 = vector.broadcast %170 : vector<1x256xf32> to vector<16x256xf32>
    %172 = arith.addf %168, %171 : vector<16x256xf32>
    %cst_73 = arith.constant 0.000000e+00 : f32
    %173 = vector.broadcast %cst_73 : f32 to vector<16x256xf32>
    %174 = arith.maximumf %172, %173 : vector<16x256xf32>
    %175 = arith.truncf %174 : vector<16x256xf32> to vector<16x256xbf16>
    %c0_74 = arith.constant 0 : index
    %c0_75 = arith.constant 0 : index
    %c0_76 = arith.constant 0 : index
    %176 = vector.load %arg14[%c0_74, %c0_75, %c0_76] : memref<2x256x64xbf16, #tpu.memory_space<vmem>>, vector<1x256x64xbf16>
    %177 = vector.shape_cast %176 : vector<1x256x64xbf16> to vector<256x64xbf16>
    %cst_77 = arith.constant dense<0.000000e+00> : vector<16x64xf32>
    %178 = tpu.matmul %175, %177, %cst_77 {dimension_numbers = #tpu.dot_dimension_numbers<[1], [0], [0], [1], [0, 0, 1, 1], [], []>} : vector<16x256xbf16>, vector<256x64xbf16>, vector<16x64xf32> -> vector<16x64xf32>
    %c0_78 = arith.constant 0 : index
    %c0_79 = arith.constant 0 : index
    %c0_80 = arith.constant 0 : index
    %179 = vector.load %arg15[%c0_78, %c0_79, %c0_80] : memref<2x1x64xf32, #tpu.memory_space<vmem>>, vector<1x1x64xf32>
    %180 = vector.shape_cast %179 : vector<1x1x64xf32> to vector<1x64xf32>
    %181 = vector.broadcast %180 : vector<1x64xf32> to vector<16x64xf32>
    %182 = arith.addf %178, %181 : vector<16x64xf32>
    %183 = arith.addf %138, %182 : vector<16x64xf32>
    %c1 = arith.constant 1 : index
    %c0_81 = arith.constant 0 : index
    %c0_82 = arith.constant 0 : index
    %184 = vector.load %arg4[%c1, %c0_81, %c0_82] : memref<2x1x64xf32, #tpu.memory_space<vmem>>, vector<1x1x64xf32>
    %185 = vector.shape_cast %184 : vector<1x1x64xf32> to vector<1x64xf32>
    %c1_83 = arith.constant 1 : index
    %c0_84 = arith.constant 0 : index
    %c0_85 = arith.constant 0 : index
    %186 = vector.load %arg5[%c1_83, %c0_84, %c0_85] : memref<2x1x64xf32, #tpu.memory_space<vmem>>, vector<1x1x64xf32>
    %187 = vector.shape_cast %186 : vector<1x1x64xf32> to vector<1x64xf32>
    %cst_86 = arith.constant dense<0.000000e+00> : vector<16xf32>
    %188 = vector.multi_reduction <add>, %183, %cst_86 [1] : vector<16x64xf32> to vector<16xf32>
    %189 = vector.shape_cast %188 : vector<16xf32> to vector<16x1xf32>
    %cst_87 = arith.constant 6.400000e+01 : f32
    %190 = vector.broadcast %cst_87 : f32 to vector<16x1xf32>
    %191 = arith.divf %189, %190 : vector<16x1xf32>
    %192 = vector.broadcast %191 : vector<16x1xf32> to vector<16x64xf32>
    %193 = arith.subf %183, %192 : vector<16x64xf32>
    %194 = arith.mulf %193, %193 : vector<16x64xf32>
    %cst_88 = arith.constant dense<0.000000e+00> : vector<16xf32>
    %195 = vector.multi_reduction <add>, %194, %cst_88 [1] : vector<16x64xf32> to vector<16xf32>
    %196 = vector.shape_cast %195 : vector<16xf32> to vector<16x1xf32>
    %cst_89 = arith.constant 6.400000e+01 : f32
    %197 = vector.broadcast %cst_89 : f32 to vector<16x1xf32>
    %198 = arith.divf %196, %197 : vector<16x1xf32>
    %199 = vector.broadcast %191 : vector<16x1xf32> to vector<16x64xf32>
    %200 = arith.subf %183, %199 : vector<16x64xf32>
    %cst_90 = arith.constant 9.99999974E-6 : f32
    %201 = vector.broadcast %cst_90 : f32 to vector<16x1xf32>
    %202 = arith.addf %198, %201 : vector<16x1xf32>
    %203 = math.rsqrt %202 : vector<16x1xf32>
    %204 = vector.broadcast %203 : vector<16x1xf32> to vector<16x64xf32>
    %205 = arith.mulf %200, %204 : vector<16x64xf32>
    %206 = vector.broadcast %185 : vector<1x64xf32> to vector<16x64xf32>
    %207 = arith.mulf %205, %206 : vector<16x64xf32>
    %208 = vector.broadcast %187 : vector<1x64xf32> to vector<16x64xf32>
    %209 = arith.addf %207, %208 : vector<16x64xf32>
    %210 = arith.truncf %209 : vector<16x64xf32> to vector<16x64xbf16>
    %c1_91 = arith.constant 1 : index
    %c0_92 = arith.constant 0 : index
    %c0_93 = arith.constant 0 : index
    %211 = vector.load %arg6[%c1_91, %c0_92, %c0_93] : memref<2x64x192xbf16, #tpu.memory_space<vmem>>, vector<1x64x192xbf16>
    %212 = vector.shape_cast %211 : vector<1x64x192xbf16> to vector<64x192xbf16>
    %cst_94 = arith.constant dense<0.000000e+00> : vector<16x192xf32>
    %213 = tpu.matmul %210, %212, %cst_94 {dimension_numbers = #tpu.dot_dimension_numbers<[1], [0], [0], [1], [0, 0, 1, 1], [], []>} : vector<16x64xbf16>, vector<64x192xbf16>, vector<16x192xf32> -> vector<16x192xf32>
    %c1_95 = arith.constant 1 : index
    %c0_96 = arith.constant 0 : index
    %c0_97 = arith.constant 0 : index
    %214 = vector.load %arg7[%c1_95, %c0_96, %c0_97] : memref<2x1x192xf32, #tpu.memory_space<vmem>>, vector<1x1x192xf32>
    %215 = vector.shape_cast %214 : vector<1x1x192xf32> to vector<1x192xf32>
    %216 = vector.broadcast %215 : vector<1x192xf32> to vector<16x192xf32>
    %217 = arith.addf %213, %216 : vector<16x192xf32>
    %218 = arith.truncf %217 : vector<16x192xf32> to vector<16x192xbf16>
    %219 = vector.extract_strided_slice %218 {offsets = [0, 0], sizes = [16, 16], strides = [1, 1]} : vector<16x192xbf16> to vector<16x16xbf16>
    %220 = vector.extract_strided_slice %218 {offsets = [0, 64], sizes = [16, 16], strides = [1, 1]} : vector<16x192xbf16> to vector<16x16xbf16>
    %221 = vector.extract_strided_slice %218 {offsets = [0, 128], sizes = [16, 16], strides = [1, 1]} : vector<16x192xbf16> to vector<16x16xbf16>
    %cst_98 = arith.constant dense<0.000000e+00> : vector<16x16xf32>
    %222 = tpu.matmul %219, %220, %cst_98 {dimension_numbers = #tpu.dot_dimension_numbers<[1], [1], [0], [0], [0, 0, 1, 0], [], []>} : vector<16x16xbf16>, vector<16x16xbf16>, vector<16x16xf32> -> vector<16x16xf32>
    %cst_99 = arith.constant 2.500000e-01 : f32
    %223 = vector.broadcast %cst_99 : f32 to vector<16x16xf32>
    %224 = arith.mulf %222, %223 : vector<16x16xf32>
    %cst_100 = arith.constant -1.000000e+30 : f32
    %225 = vector.broadcast %cst_100 : f32 to vector<16x16xf32>
    %226 = arith.select %13, %224, %225 : vector<16x16xi1>, vector<16x16xf32>
    %cst_101 = arith.constant dense<0xFF800000> : vector<16xf32>
    %227 = vector.multi_reduction <maximumf>, %226, %cst_101 [1] : vector<16x16xf32> to vector<16xf32>
    %228 = vector.shape_cast %227 : vector<16xf32> to vector<16x1xf32>
    %229 = vector.broadcast %228 : vector<16x1xf32> to vector<16x16xf32>
    %230 = arith.subf %226, %229 : vector<16x16xf32>
    %231 = math.exp %230 : vector<16x16xf32>
    %cst_102 = arith.constant dense<0.000000e+00> : vector<16xf32>
    %232 = vector.multi_reduction <add>, %231, %cst_102 [1] : vector<16x16xf32> to vector<16xf32>
    %233 = vector.shape_cast %232 : vector<16xf32> to vector<16x1xf32>
    %234 = tpu.reciprocal %233 {approx = true} : vector<16x1xf32> -> vector<16x1xf32>
    %235 = vector.broadcast %234 : vector<16x1xf32> to vector<16x16xf32>
    %236 = arith.mulf %231, %235 : vector<16x16xf32>
    %237 = arith.truncf %236 : vector<16x16xf32> to vector<16x16xbf16>
    %cst_103 = arith.constant dense<0.000000e+00> : vector<16x16xf32>
    %238 = tpu.matmul %237, %221, %cst_103 {dimension_numbers = #tpu.dot_dimension_numbers<[1], [0], [0], [1], [0, 0, 1, 1], [], []>} : vector<16x16xbf16>, vector<16x16xbf16>, vector<16x16xf32> -> vector<16x16xf32>
    %239 = vector.extract_strided_slice %218 {offsets = [0, 16], sizes = [16, 16], strides = [1, 1]} : vector<16x192xbf16> to vector<16x16xbf16>
    %240 = vector.extract_strided_slice %218 {offsets = [0, 80], sizes = [16, 16], strides = [1, 1]} : vector<16x192xbf16> to vector<16x16xbf16>
    %241 = vector.extract_strided_slice %218 {offsets = [0, 144], sizes = [16, 16], strides = [1, 1]} : vector<16x192xbf16> to vector<16x16xbf16>
    %cst_104 = arith.constant dense<0.000000e+00> : vector<16x16xf32>
    %242 = tpu.matmul %239, %240, %cst_104 {dimension_numbers = #tpu.dot_dimension_numbers<[1], [1], [0], [0], [0, 0, 1, 0], [], []>} : vector<16x16xbf16>, vector<16x16xbf16>, vector<16x16xf32> -> vector<16x16xf32>
    %cst_105 = arith.constant 2.500000e-01 : f32
    %243 = vector.broadcast %cst_105 : f32 to vector<16x16xf32>
    %244 = arith.mulf %242, %243 : vector<16x16xf32>
    %cst_106 = arith.constant -1.000000e+30 : f32
    %245 = vector.broadcast %cst_106 : f32 to vector<16x16xf32>
    %246 = arith.select %13, %244, %245 : vector<16x16xi1>, vector<16x16xf32>
    %cst_107 = arith.constant dense<0xFF800000> : vector<16xf32>
    %247 = vector.multi_reduction <maximumf>, %246, %cst_107 [1] : vector<16x16xf32> to vector<16xf32>
    %248 = vector.shape_cast %247 : vector<16xf32> to vector<16x1xf32>
    %249 = vector.broadcast %248 : vector<16x1xf32> to vector<16x16xf32>
    %250 = arith.subf %246, %249 : vector<16x16xf32>
    %251 = math.exp %250 : vector<16x16xf32>
    %cst_108 = arith.constant dense<0.000000e+00> : vector<16xf32>
    %252 = vector.multi_reduction <add>, %251, %cst_108 [1] : vector<16x16xf32> to vector<16xf32>
    %253 = vector.shape_cast %252 : vector<16xf32> to vector<16x1xf32>
    %254 = tpu.reciprocal %253 {approx = true} : vector<16x1xf32> -> vector<16x1xf32>
    %255 = vector.broadcast %254 : vector<16x1xf32> to vector<16x16xf32>
    %256 = arith.mulf %251, %255 : vector<16x16xf32>
    %257 = arith.truncf %256 : vector<16x16xf32> to vector<16x16xbf16>
    %cst_109 = arith.constant dense<0.000000e+00> : vector<16x16xf32>
    %258 = tpu.matmul %257, %241, %cst_109 {dimension_numbers = #tpu.dot_dimension_numbers<[1], [0], [0], [1], [0, 0, 1, 1], [], []>} : vector<16x16xbf16>, vector<16x16xbf16>, vector<16x16xf32> -> vector<16x16xf32>
    %259 = vector.extract_strided_slice %218 {offsets = [0, 32], sizes = [16, 16], strides = [1, 1]} : vector<16x192xbf16> to vector<16x16xbf16>
    %260 = vector.extract_strided_slice %218 {offsets = [0, 96], sizes = [16, 16], strides = [1, 1]} : vector<16x192xbf16> to vector<16x16xbf16>
    %261 = vector.extract_strided_slice %218 {offsets = [0, 160], sizes = [16, 16], strides = [1, 1]} : vector<16x192xbf16> to vector<16x16xbf16>
    %cst_110 = arith.constant dense<0.000000e+00> : vector<16x16xf32>
    %262 = tpu.matmul %259, %260, %cst_110 {dimension_numbers = #tpu.dot_dimension_numbers<[1], [1], [0], [0], [0, 0, 1, 0], [], []>} : vector<16x16xbf16>, vector<16x16xbf16>, vector<16x16xf32> -> vector<16x16xf32>
    %cst_111 = arith.constant 2.500000e-01 : f32
    %263 = vector.broadcast %cst_111 : f32 to vector<16x16xf32>
    %264 = arith.mulf %262, %263 : vector<16x16xf32>
    %cst_112 = arith.constant -1.000000e+30 : f32
    %265 = vector.broadcast %cst_112 : f32 to vector<16x16xf32>
    %266 = arith.select %13, %264, %265 : vector<16x16xi1>, vector<16x16xf32>
    %cst_113 = arith.constant dense<0xFF800000> : vector<16xf32>
    %267 = vector.multi_reduction <maximumf>, %266, %cst_113 [1] : vector<16x16xf32> to vector<16xf32>
    %268 = vector.shape_cast %267 : vector<16xf32> to vector<16x1xf32>
    %269 = vector.broadcast %268 : vector<16x1xf32> to vector<16x16xf32>
    %270 = arith.subf %266, %269 : vector<16x16xf32>
    %271 = math.exp %270 : vector<16x16xf32>
    %cst_114 = arith.constant dense<0.000000e+00> : vector<16xf32>
    %272 = vector.multi_reduction <add>, %271, %cst_114 [1] : vector<16x16xf32> to vector<16xf32>
    %273 = vector.shape_cast %272 : vector<16xf32> to vector<16x1xf32>
    %274 = tpu.reciprocal %273 {approx = true} : vector<16x1xf32> -> vector<16x1xf32>
    %275 = vector.broadcast %274 : vector<16x1xf32> to vector<16x16xf32>
    %276 = arith.mulf %271, %275 : vector<16x16xf32>
    %277 = arith.truncf %276 : vector<16x16xf32> to vector<16x16xbf16>
    %cst_115 = arith.constant dense<0.000000e+00> : vector<16x16xf32>
    %278 = tpu.matmul %277, %261, %cst_115 {dimension_numbers = #tpu.dot_dimension_numbers<[1], [0], [0], [1], [0, 0, 1, 1], [], []>} : vector<16x16xbf16>, vector<16x16xbf16>, vector<16x16xf32> -> vector<16x16xf32>
    %279 = vector.extract_strided_slice %218 {offsets = [0, 48], sizes = [16, 16], strides = [1, 1]} : vector<16x192xbf16> to vector<16x16xbf16>
    %280 = vector.extract_strided_slice %218 {offsets = [0, 112], sizes = [16, 16], strides = [1, 1]} : vector<16x192xbf16> to vector<16x16xbf16>
    %281 = vector.extract_strided_slice %218 {offsets = [0, 176], sizes = [16, 16], strides = [1, 1]} : vector<16x192xbf16> to vector<16x16xbf16>
    %cst_116 = arith.constant dense<0.000000e+00> : vector<16x16xf32>
    %282 = tpu.matmul %279, %280, %cst_116 {dimension_numbers = #tpu.dot_dimension_numbers<[1], [1], [0], [0], [0, 0, 1, 0], [], []>} : vector<16x16xbf16>, vector<16x16xbf16>, vector<16x16xf32> -> vector<16x16xf32>
    %cst_117 = arith.constant 2.500000e-01 : f32
    %283 = vector.broadcast %cst_117 : f32 to vector<16x16xf32>
    %284 = arith.mulf %282, %283 : vector<16x16xf32>
    %cst_118 = arith.constant -1.000000e+30 : f32
    %285 = vector.broadcast %cst_118 : f32 to vector<16x16xf32>
    %286 = arith.select %13, %284, %285 : vector<16x16xi1>, vector<16x16xf32>
    %cst_119 = arith.constant dense<0xFF800000> : vector<16xf32>
    %287 = vector.multi_reduction <maximumf>, %286, %cst_119 [1] : vector<16x16xf32> to vector<16xf32>
    %288 = vector.shape_cast %287 : vector<16xf32> to vector<16x1xf32>
    %289 = vector.broadcast %288 : vector<16x1xf32> to vector<16x16xf32>
    %290 = arith.subf %286, %289 : vector<16x16xf32>
    %291 = math.exp %290 : vector<16x16xf32>
    %cst_120 = arith.constant dense<0.000000e+00> : vector<16xf32>
    %292 = vector.multi_reduction <add>, %291, %cst_120 [1] : vector<16x16xf32> to vector<16xf32>
    %293 = vector.shape_cast %292 : vector<16xf32> to vector<16x1xf32>
    %294 = tpu.reciprocal %293 {approx = true} : vector<16x1xf32> -> vector<16x1xf32>
    %295 = vector.broadcast %294 : vector<16x1xf32> to vector<16x16xf32>
    %296 = arith.mulf %291, %295 : vector<16x16xf32>
    %297 = arith.truncf %296 : vector<16x16xf32> to vector<16x16xbf16>
    %cst_121 = arith.constant dense<0.000000e+00> : vector<16x16xf32>
    %298 = tpu.matmul %297, %281, %cst_121 {dimension_numbers = #tpu.dot_dimension_numbers<[1], [0], [0], [1], [0, 0, 1, 1], [], []>} : vector<16x16xbf16>, vector<16x16xbf16>, vector<16x16xf32> -> vector<16x16xf32>
    %299 = tpu.concatenate %238, %258, %278, %298 in 1 : vector<16x16xf32>, vector<16x16xf32>, vector<16x16xf32>, vector<16x16xf32> -> vector<16x64xf32>
    %300 = arith.truncf %299 : vector<16x64xf32> to vector<16x64xbf16>
    %c1_122 = arith.constant 1 : index
    %c0_123 = arith.constant 0 : index
    %c0_124 = arith.constant 0 : index
    %301 = vector.load %arg8[%c1_122, %c0_123, %c0_124] : memref<2x64x64xbf16, #tpu.memory_space<vmem>>, vector<1x64x64xbf16>
    %302 = vector.shape_cast %301 : vector<1x64x64xbf16> to vector<64x64xbf16>
    %cst_125 = arith.constant dense<0.000000e+00> : vector<16x64xf32>
    %303 = tpu.matmul %300, %302, %cst_125 {dimension_numbers = #tpu.dot_dimension_numbers<[1], [0], [0], [1], [0, 0, 1, 1], [], []>} : vector<16x64xbf16>, vector<64x64xbf16>, vector<16x64xf32> -> vector<16x64xf32>
    %c1_126 = arith.constant 1 : index
    %c0_127 = arith.constant 0 : index
    %c0_128 = arith.constant 0 : index
    %304 = vector.load %arg9[%c1_126, %c0_127, %c0_128] : memref<2x1x64xf32, #tpu.memory_space<vmem>>, vector<1x1x64xf32>
    %305 = vector.shape_cast %304 : vector<1x1x64xf32> to vector<1x64xf32>
    %306 = vector.broadcast %305 : vector<1x64xf32> to vector<16x64xf32>
    %307 = arith.addf %303, %306 : vector<16x64xf32>
    %308 = arith.addf %183, %307 : vector<16x64xf32>
    %c1_129 = arith.constant 1 : index
    %c0_130 = arith.constant 0 : index
    %c0_131 = arith.constant 0 : index
    %309 = vector.load %arg10[%c1_129, %c0_130, %c0_131] : memref<2x1x64xf32, #tpu.memory_space<vmem>>, vector<1x1x64xf32>
    %310 = vector.shape_cast %309 : vector<1x1x64xf32> to vector<1x64xf32>
    %c1_132 = arith.constant 1 : index
    %c0_133 = arith.constant 0 : index
    %c0_134 = arith.constant 0 : index
    %311 = vector.load %arg11[%c1_132, %c0_133, %c0_134] : memref<2x1x64xf32, #tpu.memory_space<vmem>>, vector<1x1x64xf32>
    %312 = vector.shape_cast %311 : vector<1x1x64xf32> to vector<1x64xf32>
    %cst_135 = arith.constant dense<0.000000e+00> : vector<16xf32>
    %313 = vector.multi_reduction <add>, %308, %cst_135 [1] : vector<16x64xf32> to vector<16xf32>
    %314 = vector.shape_cast %313 : vector<16xf32> to vector<16x1xf32>
    %cst_136 = arith.constant 6.400000e+01 : f32
    %315 = vector.broadcast %cst_136 : f32 to vector<16x1xf32>
    %316 = arith.divf %314, %315 : vector<16x1xf32>
    %317 = vector.broadcast %316 : vector<16x1xf32> to vector<16x64xf32>
    %318 = arith.subf %308, %317 : vector<16x64xf32>
    %319 = arith.mulf %318, %318 : vector<16x64xf32>
    %cst_137 = arith.constant dense<0.000000e+00> : vector<16xf32>
    %320 = vector.multi_reduction <add>, %319, %cst_137 [1] : vector<16x64xf32> to vector<16xf32>
    %321 = vector.shape_cast %320 : vector<16xf32> to vector<16x1xf32>
    %cst_138 = arith.constant 6.400000e+01 : f32
    %322 = vector.broadcast %cst_138 : f32 to vector<16x1xf32>
    %323 = arith.divf %321, %322 : vector<16x1xf32>
    %324 = vector.broadcast %316 : vector<16x1xf32> to vector<16x64xf32>
    %325 = arith.subf %308, %324 : vector<16x64xf32>
    %cst_139 = arith.constant 9.99999974E-6 : f32
    %326 = vector.broadcast %cst_139 : f32 to vector<16x1xf32>
    %327 = arith.addf %323, %326 : vector<16x1xf32>
    %328 = math.rsqrt %327 : vector<16x1xf32>
    %329 = vector.broadcast %328 : vector<16x1xf32> to vector<16x64xf32>
    %330 = arith.mulf %325, %329 : vector<16x64xf32>
    %331 = vector.broadcast %310 : vector<1x64xf32> to vector<16x64xf32>
    %332 = arith.mulf %330, %331 : vector<16x64xf32>
    %333 = vector.broadcast %312 : vector<1x64xf32> to vector<16x64xf32>
    %334 = arith.addf %332, %333 : vector<16x64xf32>
    %335 = arith.truncf %334 : vector<16x64xf32> to vector<16x64xbf16>
    %c1_140 = arith.constant 1 : index
    %c0_141 = arith.constant 0 : index
    %c0_142 = arith.constant 0 : index
    %336 = vector.load %arg12[%c1_140, %c0_141, %c0_142] : memref<2x64x256xbf16, #tpu.memory_space<vmem>>, vector<1x64x256xbf16>
    %337 = vector.shape_cast %336 : vector<1x64x256xbf16> to vector<64x256xbf16>
    %cst_143 = arith.constant dense<0.000000e+00> : vector<16x256xf32>
    %338 = tpu.matmul %335, %337, %cst_143 {dimension_numbers = #tpu.dot_dimension_numbers<[1], [0], [0], [1], [0, 0, 1, 1], [], []>} : vector<16x64xbf16>, vector<64x256xbf16>, vector<16x256xf32> -> vector<16x256xf32>
    %c1_144 = arith.constant 1 : index
    %c0_145 = arith.constant 0 : index
    %c0_146 = arith.constant 0 : index
    %339 = vector.load %arg13[%c1_144, %c0_145, %c0_146] : memref<2x1x256xf32, #tpu.memory_space<vmem>>, vector<1x1x256xf32>
    %340 = vector.shape_cast %339 : vector<1x1x256xf32> to vector<1x256xf32>
    %341 = vector.broadcast %340 : vector<1x256xf32> to vector<16x256xf32>
    %342 = arith.addf %338, %341 : vector<16x256xf32>
    %cst_147 = arith.constant 0.000000e+00 : f32
    %343 = vector.broadcast %cst_147 : f32 to vector<16x256xf32>
    %344 = arith.maximumf %342, %343 : vector<16x256xf32>
    %345 = arith.truncf %344 : vector<16x256xf32> to vector<16x256xbf16>
    %c1_148 = arith.constant 1 : index
    %c0_149 = arith.constant 0 : index
    %c0_150 = arith.constant 0 : index
    %346 = vector.load %arg14[%c1_148, %c0_149, %c0_150] : memref<2x256x64xbf16, #tpu.memory_space<vmem>>, vector<1x256x64xbf16>
    %347 = vector.shape_cast %346 : vector<1x256x64xbf16> to vector<256x64xbf16>
    %cst_151 = arith.constant dense<0.000000e+00> : vector<16x64xf32>
    %348 = tpu.matmul %345, %347, %cst_151 {dimension_numbers = #tpu.dot_dimension_numbers<[1], [0], [0], [1], [0, 0, 1, 1], [], []>} : vector<16x256xbf16>, vector<256x64xbf16>, vector<16x64xf32> -> vector<16x64xf32>
    %c1_152 = arith.constant 1 : index
    %c0_153 = arith.constant 0 : index
    %c0_154 = arith.constant 0 : index
    %349 = vector.load %arg15[%c1_152, %c0_153, %c0_154] : memref<2x1x64xf32, #tpu.memory_space<vmem>>, vector<1x1x64xf32>
    %350 = vector.shape_cast %349 : vector<1x1x64xf32> to vector<1x64xf32>
    %351 = vector.broadcast %350 : vector<1x64xf32> to vector<16x64xf32>
    %352 = arith.addf %348, %351 : vector<16x64xf32>
    %353 = arith.addf %308, %352 : vector<16x64xf32>
    %c0_155 = arith.constant 0 : index
    %c0_156 = arith.constant 0 : index
    %354 = vector.load %arg16[%c0_155, %c0_156] : memref<1x64xf32, #tpu.memory_space<vmem>>, vector<1x64xf32>
    %c0_157 = arith.constant 0 : index
    %c0_158 = arith.constant 0 : index
    %355 = vector.load %arg17[%c0_157, %c0_158] : memref<1x64xf32, #tpu.memory_space<vmem>>, vector<1x64xf32>
    %cst_159 = arith.constant dense<0.000000e+00> : vector<16xf32>
    %356 = vector.multi_reduction <add>, %353, %cst_159 [1] : vector<16x64xf32> to vector<16xf32>
    %357 = vector.shape_cast %356 : vector<16xf32> to vector<16x1xf32>
    %cst_160 = arith.constant 6.400000e+01 : f32
    %358 = vector.broadcast %cst_160 : f32 to vector<16x1xf32>
    %359 = arith.divf %357, %358 : vector<16x1xf32>
    %360 = vector.broadcast %359 : vector<16x1xf32> to vector<16x64xf32>
    %361 = arith.subf %353, %360 : vector<16x64xf32>
    %362 = arith.mulf %361, %361 : vector<16x64xf32>
    %cst_161 = arith.constant dense<0.000000e+00> : vector<16xf32>
    %363 = vector.multi_reduction <add>, %362, %cst_161 [1] : vector<16x64xf32> to vector<16xf32>
    %364 = vector.shape_cast %363 : vector<16xf32> to vector<16x1xf32>
    %cst_162 = arith.constant 6.400000e+01 : f32
    %365 = vector.broadcast %cst_162 : f32 to vector<16x1xf32>
    %366 = arith.divf %364, %365 : vector<16x1xf32>
    %367 = vector.broadcast %359 : vector<16x1xf32> to vector<16x64xf32>
    %368 = arith.subf %353, %367 : vector<16x64xf32>
    %cst_163 = arith.constant 9.99999974E-6 : f32
    %369 = vector.broadcast %cst_163 : f32 to vector<16x1xf32>
    %370 = arith.addf %366, %369 : vector<16x1xf32>
    %371 = math.rsqrt %370 : vector<16x1xf32>
    %372 = vector.broadcast %371 : vector<16x1xf32> to vector<16x64xf32>
    %373 = arith.mulf %368, %372 : vector<16x64xf32>
    %374 = vector.broadcast %354 : vector<1x64xf32> to vector<16x64xf32>
    %375 = arith.mulf %373, %374 : vector<16x64xf32>
    %376 = vector.broadcast %355 : vector<1x64xf32> to vector<16x64xf32>
    %377 = arith.addf %375, %376 : vector<16x64xf32>
    %378 = arith.truncf %377 : vector<16x64xf32> to vector<16x64xbf16>
    %c0_164 = arith.constant 0 : index
    %c0_165 = arith.constant 0 : index
    %379 = vector.load %arg18[%c0_164, %c0_165] : memref<64x128xbf16, #tpu.memory_space<vmem>>, vector<64x128xbf16>
    %cst_166 = arith.constant dense<0.000000e+00> : vector<16x128xf32>
    %380 = tpu.matmul %378, %379, %cst_166 {dimension_numbers = #tpu.dot_dimension_numbers<[1], [0], [0], [1], [0, 0, 1, 1], [], []>} : vector<16x64xbf16>, vector<64x128xbf16>, vector<16x128xf32> -> vector<16x128xf32>
    %c0_167 = arith.constant 0 : index
    %c0_168 = arith.constant 0 : index
    %381 = vector.load %arg19[%c0_167, %c0_168] : memref<1x128xf32, #tpu.memory_space<vmem>>, vector<1x128xf32>
    %382 = vector.broadcast %381 : vector<1x128xf32> to vector<16x128xf32>
    %383 = arith.addf %380, %382 : vector<16x128xf32>
    %384 = vector.shape_cast %383 : vector<16x128xf32> to vector<1x16x128xf32>
    %c0_169 = arith.constant 0 : index
    %c0_170 = arith.constant 0 : index
    %c0_171 = arith.constant 0 : index
    %385 = vector.load %arg20[%c0_169, %c0_170, %c0_171] : memref<1x16x128xf32, #tpu.memory_space<vmem>>, vector<1x16x128xf32>
    tpu.vector_store %arg20[%c0_169, %c0_170, %c0_171], %384 {strides = array<i32>} : memref<1x16x128xf32, #tpu.memory_space<vmem>>, vector<1x16x128xf32>,
    return
  }
  func.func @transform_0(%arg0: i32) -> (i32, i32, i32) {
    %c0_i32 = arith.constant 0 : i32
    %c0_i32_0 = arith.constant 0 : i32
    %c0_i32_1 = arith.constant 0 : i32
    return %arg0, %c0_i32, %c0_i32_0 : i32, i32, i32
  }
  func.func @transform_1(%arg0: i32) -> (i32, i32) {
    %c0_i32 = arith.constant 0 : i32
    %c0_i32_0 = arith.constant 0 : i32
    %c0_i32_1 = arith.constant 0 : i32
    return %c0_i32, %c0_i32_0 : i32, i32
  }
  func.func @transform_2(%arg0: i32) -> (i32, i32) {
    %c0_i32 = arith.constant 0 : i32
    %c0_i32_0 = arith.constant 0 : i32
    %c0_i32_1 = arith.constant 0 : i32
    return %c0_i32, %c0_i32_0 : i32, i32
  }
  func.func @transform_3(%arg0: i32) -> (i32, i32, i32) {
    %c0_i32 = arith.constant 0 : i32
    %c0_i32_0 = arith.constant 0 : i32
    %c0_i32_1 = arith.constant 0 : i32
    %c0_i32_2 = arith.constant 0 : i32
    return %c0_i32, %c0_i32_0, %c0_i32_1 : i32, i32, i32
  }
  func.func @transform_4(%arg0: i32) -> (i32, i32, i32) {
    %c0_i32 = arith.constant 0 : i32
    %c0_i32_0 = arith.constant 0 : i32
    %c0_i32_1 = arith.constant 0 : i32
    %c0_i32_2 = arith.constant 0 : i32
    return %c0_i32, %c0_i32_0, %c0_i32_1 : i32, i32, i32
  }
  func.func @transform_5(%arg0: i32) -> (i32, i32, i32) {
    %c0_i32 = arith.constant 0 : i32
    %c0_i32_0 = arith.constant 0 : i32
    %c0_i32_1 = arith.constant 0 : i32
    %c0_i32_2 = arith.constant 0 : i32
    return %c0_i32, %c0_i32_0, %c0_i32_1 : i32, i32, i32
  }
  func.func @transform_6(%arg0: i32) -> (i32, i32, i32) {
    %c0_i32 = arith.constant 0 : i32
    %c0_i32_0 = arith.constant 0 : i32
    %c0_i32_1 = arith.constant 0 : i32
    %c0_i32_2 = arith.constant 0 : i32
    return %c0_i32, %c0_i32_0, %c0_i32_1 : i32, i32, i32
  }
  func.func @transform_7(%arg0: i32) -> (i32, i32, i32) {
    %c0_i32 = arith.constant 0 : i32
    %c0_i32_0 = arith.constant 0 : i32
    %c0_i32_1 = arith.constant 0 : i32
    %c0_i32_2 = arith.constant 0 : i32
    return %c0_i32, %c0_i32_0, %c0_i32_1 : i32, i32, i32
  }
  func.func @transform_8(%arg0: i32) -> (i32, i32, i32) {
    %c0_i32 = arith.constant 0 : i32
    %c0_i32_0 = arith.constant 0 : i32
    %c0_i32_1 = arith.constant 0 : i32
    %c0_i32_2 = arith.constant 0 : i32
    return %c0_i32, %c0_i32_0, %c0_i32_1 : i32, i32, i32
  }
  func.func @transform_9(%arg0: i32) -> (i32, i32, i32) {
    %c0_i32 = arith.constant 0 : i32
    %c0_i32_0 = arith.constant 0 : i32
    %c0_i32_1 = arith.constant 0 : i32
    %c0_i32_2 = arith.constant 0 : i32
    return %c0_i32, %c0_i32_0, %c0_i32_1 : i32, i32, i32
  }
  func.func @transform_10(%arg0: i32) -> (i32, i32, i32) {
    %c0_i32 = arith.constant 0 : i32
    %c0_i32_0 = arith.constant 0 : i32
    %c0_i32_1 = arith.constant 0 : i32
    %c0_i32_2 = arith.constant 0 : i32
    return %c0_i32, %c0_i32_0, %c0_i32_1 : i32, i32, i32
  }
  func.func @transform_11(%arg0: i32) -> (i32, i32, i32) {
    %c0_i32 = arith.constant 0 : i32
    %c0_i32_0 = arith.constant 0 : i32
    %c0_i32_1 = arith.constant 0 : i32
    %c0_i32_2 = arith.constant 0 : i32
    return %c0_i32, %c0_i32_0, %c0_i32_1 : i32, i32, i32
  }
  func.func @transform_12(%arg0: i32) -> (i32, i32, i32) {
    %c0_i32 = arith.constant 0 : i32
    %c0_i32_0 = arith.constant 0 : i32
    %c0_i32_1 = arith.constant 0 : i32
    %c0_i32_2 = arith.constant 0 : i32
    return %c0_i32, %c0_i32_0, %c0_i32_1 : i32, i32, i32
  }
  func.func @transform_13(%arg0: i32) -> (i32, i32, i32) {
    %c0_i32 = arith.constant 0 : i32
    %c0_i32_0 = arith.constant 0 : i32
    %c0_i32_1 = arith.constant 0 : i32
    %c0_i32_2 = arith.constant 0 : i32
    return %c0_i32, %c0_i32_0, %c0_i32_1 : i32, i32, i32
  }
  func.func @transform_14(%arg0: i32) -> (i32, i32, i32) {
    %c0_i32 = arith.constant 0 : i32
    %c0_i32_0 = arith.constant 0 : i32
    %c0_i32_1 = arith.constant 0 : i32
    %c0_i32_2 = arith.constant 0 : i32
    return %c0_i32, %c0_i32_0, %c0_i32_1 : i32, i32, i32
  }
  func.func @transform_15(%arg0: i32) -> (i32, i32) {
    %c0_i32 = arith.constant 0 : i32
    %c0_i32_0 = arith.constant 0 : i32
    %c0_i32_1 = arith.constant 0 : i32
    return %c0_i32, %c0_i32_0 : i32, i32
  }
  func.func @transform_16(%arg0: i32) -> (i32, i32) {
    %c0_i32 = arith.constant 0 : i32
    %c0_i32_0 = arith.constant 0 : i32
    %c0_i32_1 = arith.constant 0 : i32
    return %c0_i32, %c0_i32_0 : i32, i32
  }
  func.func @transform_17(%arg0: i32) -> (i32, i32) {
    %c0_i32 = arith.constant 0 : i32
    %c0_i32_0 = arith.constant 0 : i32
    %c0_i32_1 = arith.constant 0 : i32
    return %c0_i32, %c0_i32_0 : i32, i32
  }
  func.func @transform_18(%arg0: i32) -> (i32, i32) {
    %c0_i32 = arith.constant 0 : i32
    %c0_i32_0 = arith.constant 0 : i32
    %c0_i32_1 = arith.constant 0 : i32
    return %c0_i32, %c0_i32_0 : i32, i32
  }
  func.func @transform_19(%arg0: i32) -> (i32, i32, i32) {
    %c0_i32 = arith.constant 0 : i32
    %c0_i32_0 = arith.constant 0 : i32
    %c0_i32_1 = arith.constant 0 : i32
    return %arg0, %c0_i32, %c0_i32_0 : i32, i32, i32
  }
}

</mosaic_0001>

<bundles_post_ra>
// kernel: minigpt_forward.1
= control target key start
LH: loop header
LB: loop body
LE: loop exit
PB: predicated region body
PF: predicated region fallthrough
CT: control target
= control target key end

     0   :  { %s4781_s0 = inlined_call_operand.vmem [shape: s32[2,16,1], index: 0, kind: input, shape index: {}]   ;;  %s4782_s1 = inlined_call_operand.vmem [shape: f32[65,64], index: 1, kind: input, shape index: {}]   ;;  %s4783_s2 = inlined_call_operand.vmem [shape: f32[16,64], index: 2, kind: input, shape index: {}]   ;;  %s4784_s3 = inlined_call_operand.vmem [shape: f32[2,1,64], index: 3, kind: input, shape index: {}]   ;;  %s4785_s4 = inlined_call_operand.vmem [shape: f32[2,1,64], index: 4, kind: input, shape index: {}]   ;;  %s4786_s5 = inlined_call_operand.vmem [shape: bf16[2,64,192], index: 5, kind: input, shape index: {}]   ;;  %s4787_s6 = inlined_call_operand.vmem [shape: f32[2,1,192], index: 6, kind: input, shape index: {}]   ;;  %s4788_s7 = inlined_call_operand.vmem [shape: bf16[2,64,64], index: 7, kind: input, shape index: {}]   ;;  %s4789_s8 = inlined_call_operand.vmem [shape: f32[2,1,64], index: 8, kind: input, shape index: {}]   ;;  %s4790_s9 = inlined_call_operand.vmem [shape: f32[2,1,64], index: 9, kind: input, shape index: {}]   ;;  %s4791_s10 = inlined_call_operand.vmem [shape: f32[2,1,64], index: 10, kind: input, shape index: {}]   ;;  %s4792_s11 = inlined_call_operand.vmem [shape: bf16[2,64,256], index: 11, kind: input, shape index: {}]   ;;  %s4793_s12 = inlined_call_operand.vmem [shape: f32[2,1,256], index: 12, kind: input, shape index: {}]   ;;  %s4794_s13 = inlined_call_operand.vmem [shape: bf16[2,256,64], index: 13, kind: input, shape index: {}]   ;;  %s4795_s14 = inlined_call_operand.vmem [shape: f32[2,1,64], index: 14, kind: input, shape index: {}]   ;;  %s4796_s15 = inlined_call_operand.vmem [shape: f32[1,64], index: 15, kind: input, shape index: {}]   ;;  %s4797_s16 = inlined_call_operand.vmem [shape: f32[1,64], index: 16, kind: input, shape index: {}]   ;;  %s4798_s17 = inlined_call_operand.vmem [shape: bf16[64,128], index: 17, kind: input, shape index: {}]   ;;  %s4799_s18 = inlined_call_operand.vmem [shape: f32[1,128], index: 18, kind: input, shape index: {}]   ;;  %s4800_s19 = inlined_call_operand.hbm [shape: f32[2,16,128], index: 19, kind: output, shape index: {}]  }
   0x1   :  { %4824 = sst [smem:[#allocation11_spill]] %s4781_s0 }
   0x2   :  { %4825 = sst [smem:[#allocation12_spill]] %s4782_s1 }
   0x3   :  { %4826 = sst [smem:[#allocation13_spill]] %s4783_s2 }
   0x4   :  { %4827 = sst [smem:[#allocation14_spill]] %s4784_s3 }
   0x5   :  { %4828 = sst [smem:[#allocation15_spill]] %s4785_s4 }
   0x6   :  { %24 = vsyncpa [#allocation3], 0 }
   0x7   :  { %26 = vsyncpa [#allocation3 + $0x1], 0  ;;  %s4048_s0 = smov 0   ;;  %s4050_s30 = smov 0  }
   0x8   :  { %s4052_s20 = smov 0   ;;  %s4054_s21 = smov 0  }
   0x9 LB: > { %4829 = sst [smem:[#allocation5_spill]] %s3921_s0  ;;  %s4069_s1 = sadd.s32 4294967295, %s3933_s21   ;;  %s3933_s21 = sphi %s4054_s21, %s4856_s21   ;;  %s3929_s20 = sphi %s4052_s20, %s4861_s20   ;;  %s3925_s30 = sphi %s4050_s30, %s4860_s30   ;;  %s3921_s0 = sphi %s4048_s0, %s4859_s0  }
   0xa   : > { %4830 = sst [smem:[#allocation6_spill]] %s3929_s20  ;;  %s3145_s22 = sadd.s32 4294967294, %s3933_s21  }
   0xb   : > { %4831 = sst [smem:[#allocation7_spill]] %s3933_s21  ;;  %s4073_s2 = sadd.s32 1, %s3933_s21  }
   0xc   : > { %4832 = sst [smem:[#allocation8_spill]] %s4073_s2  ;;  %s443_s23 = sadd.s32 1, %s3929_s20 }
   0xd   : > { %s440_s24 = ssub.s32 %s3933_s21, %s4073_s2  ;;  %p453_p0 = scmp.ne.s32.totalorder %s3929_s20, %s3925_s30 }
   0xe   : > { %p441_p1 = scmp.eq.s32.totalorder %s440_s24, 0  ;;  %p454_p2 = scmp.eq.s32.totalorder %s4069_s1, 1 }
   0xf   : > { %p459_p3 = scmp.ne.s32.totalorder %s3925_s30, %s3921_s0  ;;  %p460_p4 = scmp.eq.s32.totalorder %s3145_s22, 1 }
  0x10   : > { %s4084_s25 = scalar_select %p441_p1, %s3929_s20, %s443_s23  }
  0x11   : > { %p4086_p5 = por %p454_p2, %p453_p0  ;;  %p4090_p6 = por %p460_p4, %p459_p3 }
  0x12   : > { %4833 = sst [smem:[#allocation9_spill]] %s4084_s25  ;;  %p3148_p7 = scmp.ge.s32.totalorder %s3933_s21, 1 }
  0x13   : > { %s4835_s26 = scalar_select %p4090_p6, 1, 0 }
  0x14   : > { %p540_p8 = scmp.lt.s32.totalorder %s3933_s21, 3 }
  0x15   : > { %4836 = sst [smem:[#allocation10_spill]] %s4835_s26 }
  0x16   : > { %p541_p9 = pnand %p3148_p7, %p540_p8 }
  0x17   : > { %p596_p10 = scmp.lt.s32.totalorder (!%p541_p9), %s4069_s1, 1  ;;  %s4837_s29 = sld [smem:[#allocation12_spill]] (!%p541_p9)  ;;  %v3935_v3 = vmov (!%p541_p9), 0   ;;  %vm636_vm0 = vcmask (!%p541_p9), 1040384   ;;  %v3936_v16 = vmov (!%p541_p9), 0.0   ;;  %v604_v17 = vlaneseq (!%p541_p9) }
  0x18   : > { %544 = sbr.rel (%p541_p9) target bundleno = 6554 (0x199a), region = 96  ;;  %3664 = vset.pattern.permute.xlu0 (!%p541_p9), %v3935_v3  ;;  %862 = vmatprep.mubr.bf16.mxu1 (!%p541_p9), %v3935_v3  ;;  %s4838_s21 = sld [smem:[#allocation11_spill]] (!%p541_p9)  ;;  %vm629_vm1 = vcmask (!%p541_p9), 531456   ;;  %vm722_vm4 = vcmask (!%p541_p9), 523264   ;;  %v3695_v41 = vld [vmem:[%s4786_s5 + $0x4] ss:$8 sps:$4 sm:$0xff] (!%p541_p9)  }
  0x19   : > { %v4132_v18 = vand.u32 (!%p541_p9), 127, %v604_v17  ;;  %s4839_s23 = sld [smem:[#allocation13_spill]] (!%p541_p9)  ;;  %v3697_v42 = vld [vmem:[%s4786_s5] ss:$8 sps:$4 sm:$0xff] (!%p541_p9)   ;;  %830 = vmatprep.subr.bf16.mxu1 (!%p541_p9), %v3695_v41  ;;  %v3698_v43 = vld [vmem:[%s4786_s5 + $0x14] ss:$8 sps:$4 sm:$0xff] (!%p541_p9)  }
  0x1a   : > { %831 = vmatpush1.bf16.msra.mxu1 (!%p541_p9), %v3697_v42  ;;  %v3700_v44 = vld [vmem:[%s4786_s5 + $0x10] ss:$8 sps:$4 sm:$0xff] (!%p541_p9)   ;;  %v3701_v45 = vld [vmem:[%s4786_s5 + $0x24] ss:$8 sps:$4 sm:$0xff] (!%p541_p9)   ;;  %v3703_v46 = vld [vmem:[%s4786_s5 + $0x20] ss:$8 sps:$4 sm:$0xff] (!%p541_p9)  }
  0x1b   : > { %832 = vmatprep.subr.bf16.mxu1 (!%p541_p9), %v3698_v43  ;;  %v3704_v47 = vld [vmem:[%s4786_s5 + $0x34] ss:$8 sps:$4 sm:$0xff] (!%p541_p9)   ;;  %v3706_v48 = vld [vmem:[%s4786_s5 + $0x30] ss:$8 sps:$4 sm:$0xff] (!%p541_p9)   ;;  %s4840_s24 = sld [smem:[#allocation14_spill]] (!%p541_p9)  ;;  %s4841_s4 = sld [smem:[#allocation15_spill]] (!%p541_p9) }
  0x1c   : > { %vm3937_vm5 = vmmov (!%p541_p9), 0   ;;  %vm878_vm6 = vcmask (!%p541_p9), 130048   ;;  %s4812_s28 = smov (!%p541_p9), 112   ;;  %s4814_s20 = smov (!%p541_p9), 96   ;;  %vm1399_vm9 = vcmask (!%p541_p9), 261120   ;;  %vm1402_vm10 = vcmask (!%p541_p9), 392192  }
  0x1d   : > { %v618_v0 = vld [vmem:[%s4837_s29] sm:$0xff] (!%p541_p9)  ;;  %v619_v1 = vld [vmem:[%s4837_s29 + $0x8] sm:$0xff] (!%p541_p9)  ;;  %v620_v2 = vld [vmem:[%s4837_s29 + $0x10] sm:$0xff] (!%p541_p9)  ;;  %s4817_s2 = smov (!%p541_p9), 16   ;;  %s4850_s0 = smov (!%p541_p9), 80  }
  0x1e   : > { %v3597_v4 = vpack.c.bf16 (!%p541_p9), %v619_v1, %v618_v0  ;;  %v621_v5 = vld [vmem:[%s4837_s29 + $0x18] sm:$0xff] (!%p541_p9)  ;;  %v622_v6 = vld [vmem:[%s4837_s29 + $0x20] sm:$0xff] (!%p541_p9)  ;;  %v623_v7 = vld [vmem:[%s4837_s29 + $0x28] sm:$0xff] (!%p541_p9)  ;;  %833 = vmatpush1.bf16.msra.mxu1 (!%p541_p9), %v3700_v44  ;;  %s4851_s26 = smov (!%p541_p9), 32  }
  0x1f   : > { %s597_s25 = scalar_select %p596_p10, %s4069_s1, 1  ;;  %v3601_v8 = vpack.c.bf16 %v621_v5, %v620_v2  ;;  %v624_v9 = vld [vmem:[%s4837_s29 + $0x30] sm:$0xff]  ;;  %v625_v10 = vld [vmem:[%s4837_s29 + $0x38] sm:$0xff]  ;;  %v3605_v11 = vpack.c.bf16 %v623_v7, %v622_v6  ;;  %v626_v15 = vld [vmem:[%s4837_s29 + $0x40] sm:$0x1]  ;;  %834 = vmatprep.subr.bf16.mxu1 %v3701_v45  ;;  %v716_v2 = vshrl.u32 %v604_v17, 7 }
  0x20   : > { %3598 = vmatprep.subr.bf16.mxu0 %v3597_v4  ;;  %v3609_v14 = vpack.c.bf16 %v625_v10, %v624_v9  ;;  %v627_v23 = vld [vmem:[%s4839_s23] sm:$0xff]  ;;  %v628_v25 = vld [vmem:[%s4839_s23 + $0x8] sm:$0xff]  ;;  %s4846_s23 = smov 48  }
  0x21   : > { %s3340_s22 = sshll.u32 %s597_s25, 4  ;;  %3600 = vmatpush3.bf16.msra.mxu0 %v3597_v4  ;;  %v3157_v57 = vld [vmem:[%s4840_s24] ss:$0 sm:$0xff]  ;;  %v4189_v4 = vsub.s32 0, %v716_v2  ;;  %v4194_v6 = vsub.s32 1, %v716_v2  ;;  %vm4213_vm7 = vcmp.le.s32.totalorder %v4132_v18, %v716_v2  ;;  %s4810_s25 = smov 80  }
  0x22   : > { %s600_s27 = scalar_lea.vmem %s4838_s21, %s3340_s22  ;;  %3602 = vmatprep.subr.bf16.mxu0 %v3601_v8  ;;  %835 = vmatpush1.bf16.msra.mxu1 %v3703_v46  ;;  %v3158_v61 = vld [vmem:[%s4841_s4] ss:$0 sm:$0xff]  ;;  %s4821_s21 = smov 48  }
  0x23   : > { %v602_v12 = vld [vmem:[%s600_s27] sm:$0xff]  ;;  %v603_v13 = vld [vmem:[%s600_s27 + $0x8] sm:$0xff]  ;;  %836 = vmatprep.subr.bf16.mxu1 %v3704_v47  ;;  %s4816_s27 = smov 64   ;;  %s4819_s22 = smov 32  }
  0x24   : > { %607 = vperm.xlu0 %3664, %v602_v12   ;;  %v775_v5 = vld [vmem:[%s4787_s6] sm:$0x3] }
  0x25   : > { %3604 = vmatpush3.bf16.msra.mxu0 %v3601_v8  ;;  %v780_v7 = vrot.slane %v775_v5, %v4189_v4  ;;  %v784_v9 = vrot.slane %v775_v5, %v4194_v6 }
  0x26   : > { %3606 = vmatprep.subr.bf16.mxu0 %v3605_v11  ;;  %837 = vmatpush1.bf16.msra.mxu1 %v3706_v48 }
  0x27   : > { %3465 = vmatprep.subr.bf16.mxu1 %v3936_v16 }
  0x28   : > { %610 = vperm.xlu0 %3664, %v603_v13  }
  0x29   : > { %3608 = vmatpush3.bf16.msra.mxu0 %v3605_v11 }
  0x2a   : > { %3610 = vmatprep.subr.bf16.mxu0 %v3609_v14 }
  0x2d   : > { %3612 = vmatpush3.bf16.msra.mxu0 %v3609_v14 }
  0x2e   : > { %3460 = vmatprep.subr.msk.mxu0 %vm636_vm0, %v626_v15 }
  0x31   : > { %3461 = vmatpush3.msk.msra.mxu0 %vm636_vm0, %v626_v15 }
  0x32   : > { %3471 = vmatprep.subr.bf16.mxu0 %v3936_v16 }
  0xa3   : > { %v608_v19 = vpop.permute.xlu0 %607 }
  0xa4   : > { %vm612_vm2 = vcmp.eq.s32.totalorder %v608_v19, %v4132_v18 }
  0xa5   : > { %v3152_v20 = vsel %vm612_vm2, 1.0, %v3936_v16 }
  0xa6   : > { %3462 = vmatprep.mubr.msk.f32.mxu0 %vm629_vm1, %v3152_v20 }
  0xa7   : > { %v611_v21 = vpop.permute.xlu0 %610 }
  0xa8   : > { %vm613_vm3 = vcmp.eq.s32.totalorder %v611_v21, %v4132_v18 }
  0xa9   : > { %v3153_v22 = vsel %vm613_vm3, 1.0, %v3936_v16 }
  0xaa   : > { %3463 = vmatmul.mubr.msk.f32.vlgmr.msra.gmra.mrb[0].mxu0 %vm629_vm1, %v3153_v22 }
  0xab   : > { %3473 = vmatprep.mubr.msk.bf16.mxu0 %vm3937_vm5, %v3936_v16 }
 0x17d   : > { %v3464_v24 = vpop.f32.mrb[0].mxu0 }
 0x17e   : > { %v706_v26 = vpop.f32.mrb[1].mxu0  ;;  %v4146_v28 = vadd.f32 %v3464_v24, %v628_v25 }
 0x17f   : > { %v4144_v27 = vadd.f32 %v706_v26, %v627_v23  ;;  %v717_v23 = vadd.s32 8, %v716_v2 }
 0x180   : > { %v726_v30 = vsel %vm722_vm4, %v4146_v28, 0.0 }
 0x181   : > { %v723_v29 = vsel %vm722_vm4, %v4144_v27, 0.0  ;;  %vm4218_vm8 = vcmp.le.s32.totalorder %v4132_v18, %v717_v23 }
 0x182   : > { %724 = vadd.xlane.f32.xlu1 %v723_v29 }
 0x186   : > { %727 = vadd.xlane.f32.xlu1 %v726_v30 }
 0x20f   : > { %v725_v31 = vpop.xlane.xlu1 %724 }
 0x210   : > { %v730_v32 = vmul.f32 0.015625, %v725_v31 }
 0x212   : > { %v732_v33 = vsub.f32 %v4144_v27, %v730_v32 }
 0x213   : > { %v728_v34 = vpop.xlane.xlu1 %727 }
 0x214   : > { %v731_v35 = vmul.f32 0.015625, %v728_v34  ;;  %v734_v36 = vmul.f32 %v732_v33, %v732_v33 }
 0x216   : > { %v733_v37 = vsub.f32 %v4146_v28, %v731_v35  ;;  %v736_v38 = vsel %vm722_vm4, %v734_v36, 0.0 }
 0x217   : > { %737 = vadd.xlane.f32.xlu0 %v736_v38 }
 0x218   : > { %v735_v39 = vmul.f32 %v733_v37, %v733_v37 }
 0x21a   : > { %v739_v40 = vsel %vm722_vm4, %v735_v39, 0.0 }
 0x21b   : > { %740 = vadd.xlane.f32.xlu1 %v739_v40 }
 0x2a4   : > { %v738_v49 = vpop.xlane.xlu0 %737 }
 0x2a5   : > { %v742_v50 = vmul.f32 0.015625, %v738_v49 }
 0x2a7   : > { %v744_v51 = vadd.f32 1e-05, %v742_v50 }
 0x2a8   : > { %v741_v52 = vpop.xlane.xlu1 %740 }
 0x2a9   : > { %3787 = vrsqrt.f32 %v744_v51  ;;  %v743_v53 = vmul.f32 0.015625, %v741_v52 }
 0x2ab   : > { %v745_v54 = vadd.f32 1e-05, %v743_v53 }
 0x2ad   : > { %3789 = vrsqrt.f32 %v745_v54 }
 0x2b3   : > { %v3788_v55 = vpop.eup %3787 }
 0x2b4   : > { %v748_v56 = vmul.f32 %v3788_v55, %v732_v33 }
 0x2b6   : > { %v756_v60 = vmul.f32 %v3157_v57, %v748_v56 }
 0x2b7   : > { %v3790_v58 = vpop.eup %3789 }
 0x2b8   : > { %v749_v59 = vmul.f32 %v3790_v58, %v733_v37  ;;  %v764_v63 = vadd.f32 %v3158_v61, %v756_v60 }
 0x2ba   : > { %v757_v62 = vmul.f32 %v3157_v57, %v749_v59 }
 0x2bc   : > { %v765_v0 = vadd.f32 %v3158_v61, %v757_v62 }
 0x2be   : > { %v766_v1 = vpack.c.bf16 %v765_v0, %v764_v63 }
 0x2c0   : > { %3167 = vmatmul.mubr.msk.bf16.vlgmr.msra.gmra.mrb[0].mxu1 %vm722_vm4, %v766_v1 }
 0x2c1   : > { %3467 = vmatprep.mubr.msk.bf16.mxu1 %vm3937_vm5, %v3936_v16 }
 0x393   : > { %v864_v8 = vpop.f32.mrb[0].mxu1 }
 0x394   : > { %v866_v10 = vpop.f32.mrb[1].mxu1  ;;  %v865_v12 = vadd.f32 %v864_v8, %v780_v7 }
 0x395   : > { %v868_v11 = vpop.f32.mrb[2].mxu1  ;;  %v867_v15 = vadd.f32 %v866_v10, %v784_v9 }
 0x396   : > { %v869_v13 = vadd.f32 %v868_v11, %v780_v7  ;;  %v870_v14 = vpop.f32.mrb[3].mxu1 }
 0x397   : > { %v871_v17 = vadd.f32 %v870_v14, %v784_v9 }
 0x398   : > { %v873_v19 = vpack.c.bf16 %v869_v13, %v865_v12 }
 0x399   : > { %v4202_v20 = vpack.c.bf16 %v871_v17, %v867_v15 }
 0x39a   : > { %876 = vrot.lane.b32.xlu1 %v873_v19, %s4816_s27  ;;  %s4852_s27 = smov 16  }
 0x39b   : > { %3472 = vmatpush3.bf16.msra.mxu0 %v4202_v20 }
 0x39c   : > { %3489 = vmatprep.subr.bf16.mxu0 %v3936_v16 }
 0x40c   : > { %v877_v21 = vpop.permute.xlu1 %876 }
 0x40d   : > { %v883_v22 = vsel %vm878_vm6, %v877_v21, 0 }
 0x40e   : > { %3466 = vmatpush3.bf16.xpose.msra.mxu1 %v883_v22 }
 0x40f   : > { %3477 = vmatprep.subr.bf16.mxu1 %v3936_v16 }
 0x415   : > { %3468 = vmatmul.mubr.msk.bf16.vlgmr.msra.gmra.mrb[4].mxu1 %vm878_vm6, %v873_v19 }
 0x416   : > { %3479 = vmatprep.mubr.msk.bf16.mxu1 %vm3937_vm5, %v3936_v16 }
 0x4e8   : > { %v919_v25 = vpop.f32.mrb[4].mxu1 }
 0x4e9   : > { %v926_v26 = vmul.f32 0.25, %v919_v25  ;;  %v3469_v29 = vpop.f32.mrb[5].mxu1 }
 0x4ea   : > { %v922_v31 = vpop.f32.mrb[6].mxu1 }
 0x4eb   : > { %v927_v32 = vmul.f32 0.25, %v922_v31  ;;  %v3470_v33 = vpop.f32.mrb[7].mxu1  ;;  %v928_v34 = vsel %vm4213_vm7, %v926_v26, -1e+30 }
 0x4ec   : > { %v930_v35 = vsel %vm878_vm6, %v928_v34, -inf }
 0x4ed   : > { %931 = vmax.xlane.f32.xlu1 %v930_v35  ;;  %v929_v36 = vsel %vm4218_vm8, %v927_v32, -1e+30 }
 0x4ee   : > { %v933_v37 = vsel %vm878_vm6, %v929_v36, -inf }
 0x4ef   : > { %934 = vmax.xlane.f32.xlu0 %v933_v37 }
 0x4fe   : > { %997 = vrot.lane.b32.xlu1 %v873_v19, %s4812_s28 }
 0x502   : > { %1248 = vrot.lane.b32.xlu1 %v873_v19, %s4810_s25 }
 0x505   : > { %999 = vrot.lane.b32.xlu0 %v873_v19, %s4821_s21 }
 0x57a   : > { %v932_v18 = vpop.xlane.xlu1 %931 }
 0x57b   : > { %v936_v38 = vsub.f32 %v928_v34, %v932_v18 }
 0x57c   : > { %v935_v39 = vpop.xlane.xlu0 %934 }
 0x57d   : > { %v938_v40 = vmul.f32 1.442695, %v936_v38  ;;  %v937_v41 = vsub.f32 %v929_v36, %v935_v39 }
 0x57e   : > { %v998_v45 = vpop.permute.xlu1 %997 }
 0x57f   : > { %3791 = vpow2.f32 %v938_v40  ;;  %v940_v42 = vmul.f32 1.442695, %v937_v41 }
 0x580   : > { %v1000_v43 = vpop.permute.xlu0 %999 }
 0x581   : > { %3793 = vpow2.f32 %v940_v42  ;;  %v1005_v44 = vsel %vm878_vm6, %v1000_v43, 0 }
 0x582   : > { %3478 = vmatpush3.bf16.xpose.msra.mxu1 %v1005_v44  ;;  %v1249_v62 = vpop.permute.xlu1 %1248 }
 0x583   : > { %3483 = vmatprep.subr.bf16.mxu1 %v3936_v16 }
 0x589   : > { %v3792_v46 = vpop.eup %3791  ;;  %3480 = vmatmul.mubr.msk.bf16.vlgmr.msra.gmra.mrb[8].mxu1 %vm878_vm6, %v998_v45 }
 0x58a   : > { %v942_v47 = vsel %vm878_vm6, %v3792_v46, 0.0  ;;  %3485 = vmatprep.mubr.msk.bf16.mxu1 %vm3937_vm5, %v3936_v16 }
 0x58b   : > { %v3794_v48 = vpop.eup %3793  ;;  %943 = vadd.xlane.f32.xlu0 %v942_v47 }
 0x58c   : > { %v945_v49 = vsel %vm878_vm6, %v3794_v48, 0.0 }
 0x58f   : > { %946 = vadd.xlane.f32.xlu0 %v945_v49 }
 0x5a5   : > { %1125 = vrot.lane.b32.xlu0 %v873_v19, %s4819_s22 }
 0x5a9   : > { %1123 = vrot.lane.b32.xlu0 %v873_v19, %s4814_s20 }
 0x5ad   : > { %1250 = vrot.lane.b32.xlu0 %v873_v19, %s4817_s2 }
 0x618   : > { %v944_v50 = vpop.xlane.xlu0 %943 }
 0x619   : > { %3795 = vrcp.f32 %v944_v50 }
 0x61c   : > { %v947_v51 = vpop.xlane.xlu0 %946 }
 0x61d   : > { %3797 = vrcp.f32 %v947_v51 }
 0x620   : > { %v1126_v53 = vpop.permute.xlu0 %1125 }
 0x621   : > { %v1131_v59 = vsel %vm878_vm6, %v1126_v53, 0 }
 0x623   : > { %v3796_v52 = vpop.eup %3795 }
 0x624   : > { %v950_v55 = vmul.f32 %v3796_v52, %v3792_v46  ;;  %v1124_v58 = vpop.permute.xlu0 %1123 }
 0x627   : > { %v3798_v54 = vpop.eup %3797 }
 0x628   : > { %v951_v56 = vmul.f32 %v3798_v54, %v3794_v48  ;;  %v1251_v60 = vpop.permute.xlu0 %1250 }
 0x629   : > { %v1256_v61 = vsel %vm878_vm6, %v1251_v60, 0 }
 0x62a   : > { %v952_v57 = vpack.c.bf16 %v951_v56, %v950_v55 }
 0x62c   : > { %3474 = vmatmul.mubr.msk.bf16.vlgmr.msra.gmra.mrb[4].mxu0 %vm878_vm6, %v952_v57 }
 0x62d   : > { %3490 = vmatpush3.bf16.xpose.msra.mxu0 %v1131_v59  ;;  %3491 = vmatprep.mubr.msk.bf16.mxu0 %vm3937_vm5, %v3936_v16 }
 0x62e   : > { %3501 = vmatprep.subr.bf16.mxu0 %v3936_v16 }
 0x634   : > { %3492 = vmatmul.mubr.msk.bf16.vlgmr.msra.gmra.mrb[8].mxu0 %vm878_vm6, %v1124_v58 }
 0x635   : > { %3502 = vmatpush3.bf16.xpose.msra.mxu0 %v1256_v61  ;;  %3503 = vmatprep.mubr.msk.bf16.mxu0 %vm3937_vm5, %v3936_v16 }
 0x636   : > { %3513 = vmatprep.subr.bf16.mxu0 %v3936_v16 }
 0x63c   : > { %3504 = vmatmul.mubr.msk.bf16.vlgmr.msra.gmra.mrb[12].mxu0 %vm878_vm6, %v1249_v62 }
 0x63d   : > { %3521 = vmatprep.mubr.msk.bf16.mxu0 %vm3937_vm5, %v3936_v16 }
 0x65c   : > { %v1041_v63 = vpop.f32.mrb[8].mxu1 }
 0x65d   : > { %v1048_v0 = vmul.f32 0.25, %v1041_v63  ;;  %v3481_v1 = vpop.f32.mrb[9].mxu1 }
 0x65e   : > { %v1044_v2 = vpop.f32.mrb[10].mxu1 }
 0x65f   : > { %v1049_v5 = vmul.f32 0.25, %v1044_v2  ;;  %v3482_v7 = vpop.f32.mrb[11].mxu1  ;;  %v1050_v8 = vsel %vm4213_vm7, %v1048_v0, -1e+30 }
 0x660   : > { %v1052_v9 = vsel %vm878_vm6, %v1050_v8, -inf }
 0x661   : > { %1053 = vmax.xlane.f32.xlu0 %v1052_v9  ;;  %v1051_v10 = vsel %vm4218_vm8, %v1049_v5, -1e+30 }
 0x662   : > { %v1055_v11 = vsel %vm878_vm6, %v1051_v10, -inf }
 0x663   : > { %1056 = vmax.xlane.f32.xlu1 %v1055_v11 }
 0x6ee   : > { %v1054_v12 = vpop.xlane.xlu0 %1053 }
 0x6ef   : > { %v1058_v19 = vsub.f32 %v1050_v8, %v1054_v12 }
 0x6f0   : > { %v1057_v15 = vpop.xlane.xlu1 %1056 }
 0x6f1   : > { %v1059_v22 = vsub.f32 %v1051_v10, %v1057_v15  ;;  %v1060_v23 = vmul.f32 1.442695, %v1058_v19 }
 0x6f3   : > { %v1062_v26 = vmul.f32 1.442695, %v1059_v22  ;;  %3799 = vpow2.f32 %v1060_v23 }
 0x6f5   : > { %3801 = vpow2.f32 %v1062_v26 }
 0x6fd   : > { %v3800_v46 = vpop.eup %3799 }
 0x6fe   : > { %v1064_v50 = vsel %vm878_vm6, %v3800_v46, 0.0 }
 0x6ff   : > { %v4260_v13 = vpop.f32.mrb[4].mxu0  ;;  %v3802_v49 = vpop.eup %3801 }
 0x700   : > { %v3475_v14 = vpop.f32.mrb[5].mxu0  ;;  %v1067_v51 = vsel %vm878_vm6, %v3802_v49, 0.0 }
 0x701   : > { %v4262_v17 = vpop.f32.mrb[6].mxu0 }
 0x702   : > { %v3476_v21 = vpop.f32.mrb[7].mxu0 }
 0x707   : > { %v1167_v25 = vpop.f32.mrb[8].mxu0 }
 0x708   : > { %v1174_v29 = vmul.f32 0.25, %v1167_v25  ;;  %v3493_v31 = vpop.f32.mrb[9].mxu0 }
 0x709   : > { %v1170_v32 = vpop.f32.mrb[10].mxu0 }
 0x70a   : > { %v1175_v33 = vmul.f32 0.25, %v1170_v32  ;;  %v3494_v34 = vpop.f32.mrb[11].mxu0  ;;  %v1176_v35 = vsel %vm4213_vm7, %v1174_v29, -1e+30 }
 0x70b   : > { %v1178_v36 = vsel %vm878_vm6, %v1176_v35, -inf }
 0x70c   : > { %1179 = vmax.xlane.f32.xlu0 %v1178_v36  ;;  %v1177_v37 = vsel %vm4218_vm8, %v1175_v33, -1e+30 }
 0x70d   : > { %v1181_v38 = vsel %vm878_vm6, %v1177_v37, -inf }
 0x70f   : > { %v1292_v18 = vpop.f32.mrb[12].mxu0 }
 0x710   : > { %v1299_v39 = vmul.f32 0.25, %v1292_v18  ;;  %v3505_v40 = vpop.f32.mrb[13].mxu0  ;;  %1182 = vmax.xlane.f32.xlu0 %v1181_v38 }
 0x711   : > { %v1295_v41 = vpop.f32.mrb[14].mxu0 }
 0x712   : > { %v1300_v42 = vmul.f32 0.25, %v1295_v41  ;;  %v3506_v43 = vpop.f32.mrb[15].mxu0  ;;  %v1301_v44 = vsel %vm4213_vm7, %v1299_v39, -1e+30 }
 0x713   : > { %v1303_v45 = vsel %vm878_vm6, %v1301_v44, -inf }
 0x714   : > { %1304 = vmax.xlane.f32.xlu1 %v1303_v45  ;;  %v1302_v47 = vsel %vm4218_vm8, %v1300_v42, -1e+30 }
 0x715   : > { %v1306_v48 = vsel %vm878_vm6, %v1302_v47, -inf }
 0x716   : > { %1307 = vmax.xlane.f32.xlu0 %v1306_v48  ;;  %v3708_v48 = vld [vmem:[%s4788_s7 + $0x8] sm:$0xff]  }
 0x718   : > { %1065 = vadd.xlane.f32.xlu1 %v1064_v50 }
 0x71a   : > { %1068 = vadd.xlane.f32.xlu0 %v1067_v51 }
 0x729   : > { %1076 = vrot.lane.b32.xlu1 %v4202_v20, %s4812_s28  ;;  %s3945_s28 = smov [#allocation2]  }
 0x799   : > { %v1180_v52 = vpop.xlane.xlu0 %1179 }
 0x79a   : > { %v1184_v53 = vsub.f32 %v1176_v35, %v1180_v52  ;;  %v3710_v52 = vld [vmem:[%s4788_s7 + $0x18] sm:$0xff]  }
 0x79c   : > { %v1186_v54 = vmul.f32 1.442695, %v1184_v53 }
 0x79d   : > { %v1183_v55 = vpop.xlane.xlu0 %1182 }
 0x79e   : > { %3803 = vpow2.f32 %v1186_v54  ;;  %v1185_v56 = vsub.f32 %v1177_v37, %v1183_v55 }
 0x7a0   : > { %v1188_v57 = vmul.f32 1.442695, %v1185_v56 }
 0x7a1   : > { %v1305_v58 = vpop.xlane.xlu1 %1304 }
 0x7a2   : > { %3805 = vpow2.f32 %v1188_v57  ;;  %v1309_v59 = vsub.f32 %v1301_v44, %v1305_v58 }
 0x7a3   : > { %v1308_v60 = vpop.xlane.xlu0 %1307 }
 0x7a4   : > { %v1311_v61 = vmul.f32 1.442695, %v1309_v59  ;;  %v1310_v62 = vsub.f32 %v1302_v47, %v1308_v60  ;;  %v3707_v47 = vld [vmem:[%s4788_s7] sm:$0xff]  }
 0x7a5   : > { %v1066_v63 = vpop.xlane.xlu1 %1065  ;;  %3514 = vmatpush3.bf16.msra.mxu0 %v3707_v47  ;;  %v3722_v47 = vld [vmem:[%s4792_s11 + $0x34] ss:$8 sps:$4 sm:$0xff]  }
 0x7a6   : > { %3807 = vpow2.f32 %v1311_v61  ;;  %v1313_v0 = vmul.f32 1.442695, %v1310_v62  ;;  %3515 = vmatprep.subr.bf16.mxu0 %v3936_v16 }
 0x7a7   : > { %3809 = vrcp.f32 %v1066_v63  ;;  %v1069_v1 = vpop.xlane.xlu0 %1068 }
 0x7a8   : > { %v3804_v2 = vpop.eup %3803  ;;  %3811 = vpow2.f32 %v1313_v0 }
 0x7a9   : > { %3813 = vrcp.f32 %v1069_v1  ;;  %v1077_v5 = vpop.permute.xlu1 %1076  ;;  %v1190_v7 = vsel %vm878_vm6, %v3804_v2, 0.0  ;;  %3516 = vmatpush3.bf16.msra.mxu0 %v3708_v48  ;;  %v3723_v48 = vld [vmem:[%s4794_s13 + $0x40] sm:$0xff]  }
 0x7aa   : > { %1191 = vadd.xlane.f32.xlu1 %v1190_v7  ;;  %3484 = vmatpush3.bf16.msra.mxu1 %v1077_v5 }
 0x7ab   : > { %3495 = vmatprep.subr.bf16.mxu1 %v3936_v16  ;;  %3517 = vmatprep.subr.bf16.mxu0 %v3936_v16 }
 0x7ac   : > { %v3806_v8 = vpop.eup %3805 }
 0x7ad   : > { %v1193_v9 = vsel %vm878_vm6, %v3806_v8, 0.0 }
 0x7ae   : > { %1194 = vadd.xlane.f32.xlu0 %v1193_v9 }
 0x7b0   : > { %v3808_v10 = vpop.eup %3807 }
 0x7b1   : > { %v3810_v11 = vpop.eup %3809  ;;  %v1315_v12 = vsel %vm878_vm6, %v3808_v10, 0.0 }
 0x7b2   : > { %v3812_v14 = vpop.eup %3811  ;;  %1316 = vadd.xlane.f32.xlu1 %v1315_v12  ;;  %v1072_v21 = vmul.f32 %v3810_v11, %v3800_v46 }
 0x7b3   : > { %v3814_v15 = vpop.eup %3813  ;;  %v1318_v19 = vsel %vm878_vm6, %v3812_v14, 0.0 }
 0x7b4   : > { %v1073_v22 = vmul.f32 %v3814_v15, %v3802_v49  ;;  %1319 = vadd.xlane.f32.xlu0 %v1318_v19  ;;  %v3709_v49 = vld [vmem:[%s4788_s7 + $0x10] sm:$0xff]  }
 0x7b5   : > { %3518 = vmatpush3.bf16.msra.mxu0 %v3709_v49  ;;  %v3724_v49 = vld [vmem:[%s4794_s13] sm:$0xff]  }
 0x7b6   : > { %v1074_v23 = vpack.c.bf16 %v1073_v22, %v1072_v21  ;;  %3519 = vmatprep.subr.bf16.mxu0 %v3936_v16 }
 0x7b8   : > { %3486 = vmatmul.mubr.msk.bf16.vlgmr.msra.gmra.mrb[12].mxu1 %vm878_vm6, %v1074_v23 }
 0x7b9   : > { %3497 = vmatprep.mubr.msk.bf16.mxu1 %vm3937_vm5, %v3936_v16  ;;  %3520 = vmatpush3.bf16.msra.mxu0 %v3710_v52  ;;  %v3727_v52 = vld [vmem:[%s4794_s13 + $0x50] sm:$0xff]  }
 0x7ba   : > { %3374 = vmatprep.subr.bf16.mxu0 %v3723_v48 }
 0x7c3   : > { %1326 = vrot.lane.b32.xlu1 %v4202_v20, %s4810_s25  ;;  %s4848_s25 = smov 96  }
 0x7ca   : > { %1201 = vrot.lane.b32.xlu0 %v4202_v20, %s4814_s20  ;;  %s4849_s20 = smov 112  }
 0x837   : > { %v1192_v25 = vpop.xlane.xlu1 %1191 }
 0x838   : > { %3815 = vrcp.f32 %v1192_v25 }
 0x83b   : > { %v1195_v26 = vpop.xlane.xlu0 %1194 }
 0x83c   : > { %3817 = vrcp.f32 %v1195_v26 }
 0x83f   : > { %v1317_v29 = vpop.xlane.xlu1 %1316 }
 0x840   : > { %3819 = vrcp.f32 %v1317_v29 }
 0x841   : > { %v1320_v31 = vpop.xlane.xlu0 %1319 }
 0x842   : > { %3821 = vrcp.f32 %v1320_v31  ;;  %v3816_v32 = vpop.eup %3815 }
 0x843   : > { %v1198_v35 = vmul.f32 %v3816_v32, %v3804_v2  ;;  %v1327_v38 = vpop.permute.xlu1 %1326 }
 0x845   : > { %v1202_v33 = vpop.permute.xlu0 %1201 }
 0x846   : > { %v3818_v34 = vpop.eup %3817  ;;  %3496 = vmatpush3.bf16.msra.mxu1 %v1202_v33 }
 0x847   : > { %v1199_v36 = vmul.f32 %v3818_v34, %v3806_v8  ;;  %3507 = vmatprep.subr.bf16.mxu1 %v3936_v16 }
 0x849   : > { %v1200_v37 = vpack.c.bf16 %v1199_v36, %v1198_v35 }
 0x84a   : > { %v3820_v18 = vpop.eup %3819 }
 0x84b   : > { %3498 = vmatmul.mubr.msk.bf16.vlgmr.msra.gmra.mrb[16].mxu1 %vm878_vm6, %v1200_v37  ;;  %v1323_v40 = vmul.f32 %v3820_v18, %v3808_v10 }
 0x84c   : > { %v3822_v20 = vpop.eup %3821  ;;  %3508 = vmatpush3.bf16.msra.mxu1 %v1327_v38  ;;  %3509 = vmatprep.mubr.msk.bf16.mxu1 %vm3937_vm5, %v3936_v16 }
 0x84d   : > { %v1324_v39 = vmul.f32 %v3822_v20, %v3812_v14 }
 0x84f   : > { %v1325_v41 = vpack.c.bf16 %v1324_v39, %v1323_v40  ;;  %v3713_v40 = vld [vmem:[%s4792_s11 + $0x4] ss:$8 sps:$4 sm:$0xff]  }
 0x850   : > { %1599 = vmatprep.subr.bf16.mxu1 %v3713_v40 }
 0x853   : > { %3510 = vmatmul.mubr.msk.bf16.vlgmr.msra.gmra.mrb[20].mxu1 %vm878_vm6, %v1325_v41  ;;  %v3711_v41 = vld [vmem:[%s4792_s11] ss:$8 sps:$4 sm:$0xff]  }
 0x854   : > { %1631 = vmatprep.mubr.bf16.mxu1 %v3935_v3  ;;  %1600 = vmatpush1.bf16.msra.mxu1 %v3711_v41 }
 0x88b   : > { %v1116_v42 = vpop.f32.mrb[12].mxu1 }
 0x88c   : > { %v3487_v43 = vpop.f32.mrb[13].mxu1 }
 0x88d   : > { %v1119_v44 = vpop.f32.mrb[14].mxu1  ;;  %v3714_v43 = vld [vmem:[%s4792_s11 + $0x10] ss:$8 sps:$4 sm:$0xff]  }
 0x88e   : > { %v3665_v45 = vpack.i.bf16 %v1119_v44, %v1116_v42  ;;  %v3488_v46 = vpop.f32.mrb[15].mxu1  ;;  %v3716_v42 = vld [vmem:[%s4792_s11 + $0x14] ss:$8 sps:$4 sm:$0xff]   ;;  %v3719_v44 = vld [vmem:[%s4792_s11 + $0x24] ss:$8 sps:$4 sm:$0xff]  }
 0x88f   : > { %1601 = vmatprep.subr.bf16.mxu1 %v3716_v42  ;;  %v3720_v46 = vld [vmem:[%s4792_s11 + $0x30] ss:$8 sps:$4 sm:$0xff]  }
 0x890   : > { %3666 = vrot.lane.b32.xlu1 %v3665_v45, %s4817_s2  ;;  %1602 = vmatpush1.bf16.msra.mxu1 %v3714_v43  ;;  %v3717_v45 = vld [vmem:[%s4792_s11 + $0x20] ss:$8 sps:$4 sm:$0xff]  }
 0x891   : > { %1603 = vmatprep.subr.bf16.mxu1 %v3719_v44  ;;  %v3193_v43 = vld [vmem:[%s4795_s14] ss:$0 sm:$0xff] }
 0x894   : > { %1604 = vmatpush1.bf16.msra.mxu1 %v3717_v45 }
 0x895   : > { %1605 = vmatprep.subr.bf16.mxu1 %v3722_v47 }
 0x898   : > { %1606 = vmatpush1.bf16.msra.mxu1 %v3720_v46 }
 0x902   : > { %v3667_v61 = vpop.permute.xlu1 %3666 }
 0x903   : > { %v3669_v63 = vunpack.i.h.bf16 %v3667_v61  ;;  %v3668_v0 = vunpack.i.l.bf16 %v3667_v61 }
 0x905   : > { %v1398_v7 = vsel %vm878_vm6, %v4262_v17, %v3669_v63  ;;  %v1397_v8 = vsel %vm878_vm6, %v4260_v13, %v3668_v0  ;;  %v3176_v17 = vld [vmem:[%s4789_s8] ss:$0 sm:$0xff] }
 0x91e   : > { %v1241_v50 = vpop.f32.mrb[16].mxu1 }
 0x91f   : > { %v3499_v51 = vpop.f32.mrb[17].mxu1 }
 0x920   : > { %v1244_v53 = vpop.f32.mrb[18].mxu1  ;;  %v3726_v51 = vld [vmem:[%s4794_s13 + $0x8] sm:$0xff]  }
 0x921   : > { %v3670_v54 = vpack.i.bf16 %v1244_v53, %v1241_v50  ;;  %v3500_v55 = vpop.f32.mrb[19].mxu1  ;;  %v3725_v50 = vld [vmem:[%s4794_s13 + $0x48] sm:$0xff]   ;;  %v3728_v53 = vld [vmem:[%s4794_s13 + $0x10] sm:$0xff]  }
 0x922   : > { %v3730_v55 = vld [vmem:[%s4794_s13 + $0x18] sm:$0xff]  }
 0x923   : > { %3671 = vrot.lane.b32.xlu0 %v3670_v54, %s4819_s22  ;;  %v3729_v54 = vld [vmem:[%s4794_s13 + $0x58] sm:$0xff]   ;;  %s3875_s22 = sshll.u32 %s3945_s28, 4  ;;  %s3876_s22 = int_to_ptr.vmem [resolvable:$false] %s3875_s22 }
 0x926   : > { %v1366_v56 = vpop.f32.mrb[20].mxu1 }
 0x927   : > { %v3511_v57 = vpop.f32.mrb[21].mxu1 }
 0x928   : > { %v1369_v58 = vpop.f32.mrb[22].mxu1  ;;  %v3732_v57 = vld [vmem:[%s4794_s13 + $0x20] sm:$0xff]  }
 0x929   : > { %v3675_v59 = vpack.i.bf16 %v1369_v58, %v1366_v56  ;;  %v3512_v60 = vpop.f32.mrb[23].mxu1  ;;  %v3731_v56 = vld [vmem:[%s4794_s13 + $0x60] sm:$0xff]   ;;  %v3733_v58 = vld [vmem:[%s4794_s13 + $0x68] sm:$0xff]  }
 0x92b   : > { %3676 = vrot.lane.b32.xlu1 %v3675_v59, %s4821_s21  ;;  %s4847_s21 = smov 64  }
 0x995   : > { %v3672_v62 = vpop.permute.xlu0 %3671 }
 0x996   : > { %v3674_v1 = vunpack.i.h.bf16 %v3672_v62  ;;  %v3673_v2 = vunpack.i.l.bf16 %v3672_v62 }
 0x998   : > { %v1401_v11 = vsel %vm1399_vm9, %v1398_v7, %v3674_v1  ;;  %v1400_v12 = vsel %vm1399_vm9, %v1397_v8, %v3673_v2 }
 0x99d   : > { %v3677_v5 = vpop.permute.xlu1 %3676 }
 0x99e   : > { %v3679_v9 = vunpack.i.h.bf16 %v3677_v5  ;;  %v3678_v10 = vunpack.i.l.bf16 %v3677_v5  ;;  %v3182_v5 = vld [vmem:[%s4790_s9] ss:$0 sm:$0xff] }
 0x9a0   : > { %v1404_v14 = vsel %vm1402_vm10, %v1401_v11, %v3679_v9  ;;  %v1403_v15 = vsel %vm1402_vm10, %v1400_v12, %v3678_v10  ;;  %v3183_v10 = vld [vmem:[%s4791_s10] ss:$0 sm:$0xff] }
 0x9a1   : > { %v1405_v19 = vpack.c.bf16 %v1404_v14, %v1403_v15 }
 0x9a3   : > { %3522 = vmatmul.mubr.msk.bf16.vlgmr.msra.gmra.mrb[16].mxu0 %vm722_vm4, %v1405_v19  ;;  %v3734_v19 = vld [vmem:[%s4794_s13 + $0x28] sm:$0xff]  }
 0x9a4   : > { %3375 = vmatpush3.bf16.msra.mxu0 %v3724_v49 }
 0x9a5   : > { %3376 = vmatprep.subr.bf16.mxu0 %v3725_v50 }
 0x9a8   : > { %3377 = vmatpush3.bf16.msra.mxu0 %v3726_v51 }
 0x9a9   : > { %3378 = vmatprep.subr.bf16.mxu0 %v3727_v52 }
 0x9ac   : > { %3379 = vmatpush3.bf16.msra.mxu0 %v3728_v53 }
 0x9ad   : > { %3380 = vmatprep.subr.bf16.mxu0 %v3729_v54 }
 0x9b0   : > { %3381 = vmatpush3.bf16.msra.mxu0 %v3730_v55 }
 0x9b1   : > { %3382 = vmatprep.subr.bf16.mxu0 %v3731_v56 }
 0x9b4   : > { %3383 = vmatpush3.bf16.msra.mxu0 %v3732_v57 }
 0x9b5   : > { %3384 = vmatprep.subr.bf16.mxu0 %v3733_v58 }
 0x9b8   : > { %3385 = vmatpush3.bf16.msra.mxu0 %v3734_v19 }
 0xa76   : > { %v1482_v21 = vpop.f32.mrb[16].mxu0 }
 0xa77   : > { %v1483_v22 = vadd.f32 %v3176_v17, %v1482_v21  ;;  %v3523_v13 = vpop.f32.mrb[17].mxu0  ;;  %v3736_v21 = vld [vmem:[%s4794_s13 + $0x30] sm:$0xff]  }
 0xa78   : > { %v1485_v23 = vpop.f32.mrb[18].mxu0  ;;  %v3738_v13 = vld [vmem:[%s4794_s13 + $0x38] sm:$0xff]  }
 0xa79   : > { %v4329_v25 = vadd.f32 %v1483_v22, %v4144_v27  ;;  %v1486_v26 = vadd.f32 %v3176_v17, %v1485_v23  ;;  %v3524_v29 = vpop.f32.mrb[19].mxu0  ;;  %v3735_v17 = vld [vmem:[%s4794_s13 + $0x70] sm:$0xff]   ;;  %v3737_v22 = vld [vmem:[%s4794_s13 + $0x78] sm:$0xff]   ;;  %v1544_v23 = vld [vmem:[%s4793_s12] sm:$0x3] }
 0xa7a   : > { %3386 = vmatprep.subr.bf16.mxu0 %v3735_v17  ;;  %v1553_v29 = vrot.slane %v1544_v23, %v4194_v6 }
 0xa7b   : > { %v4332_v31 = vadd.f32 %v1486_v26, %v4146_v28  ;;  %v1493_v32 = vsel %vm722_vm4, %v4329_v25, 0.0  ;;  %3387 = vmatpush3.bf16.msra.mxu0 %v3736_v21  ;;  %v1549_v26 = vrot.slane %v1544_v23, %v4189_v4  ;;  %v3212_v21 = vld [vmem:[%s4840_s24 + $0x1] ss:$0 sm:$0xff] }
 0xa7c   : > { %1494 = vadd.xlane.f32.xlu0 %v1493_v32  ;;  %3388 = vmatprep.subr.bf16.mxu0 %v3737_v22 }
 0xa7d   : > { %v1496_v33 = vsel %vm722_vm4, %v4332_v31, 0.0 }
 0xa7e   : > { %1497 = vadd.xlane.f32.xlu1 %v1496_v33 }
 0xa7f   : > { %3389 = vmatpush3.bf16.msra.mxu0 %v3738_v13 }
 0xa80   : > { %3537 = vmatprep.subr.bf16.mxu0 %v3936_v16 }
 0xb09   : > { %v1495_v34 = vpop.xlane.xlu0 %1494 }
 0xb0a   : > { %v1499_v35 = vmul.f32 0.015625, %v1495_v34 }
 0xb0b   : > { %v1498_v36 = vpop.xlane.xlu1 %1497 }
 0xb0c   : > { %v1501_v37 = vsub.f32 %v4329_v25, %v1499_v35  ;;  %v1500_v27 = vmul.f32 0.015625, %v1498_v36 }
 0xb0e   : > { %v1502_v18 = vsub.f32 %v4332_v31, %v1500_v27  ;;  %v1503_v38 = vmul.f32 %v1501_v37, %v1501_v37 }
 0xb10   : > { %v1505_v28 = vsel %vm722_vm4, %v1503_v38, 0.0  ;;  %v1504_v20 = vmul.f32 %v1502_v18, %v1502_v18 }
 0xb11   : > { %1506 = vadd.xlane.f32.xlu0 %v1505_v28 }
 0xb12   : > { %v1508_v39 = vsel %vm722_vm4, %v1504_v20, 0.0 }
 0xb15   : > { %1509 = vadd.xlane.f32.xlu0 %v1508_v39 }
 0xb9e   : > { %v1507_v59 = vpop.xlane.xlu0 %1506 }
 0xb9f   : > { %v1511_v60 = vmul.f32 0.015625, %v1507_v59 }
 0xba1   : > { %v1513_v61 = vadd.f32 1e-05, %v1511_v60 }
 0xba2   : > { %v1510_v62 = vpop.xlane.xlu0 %1509 }
 0xba3   : > { %3823 = vrsqrt.f32 %v1513_v61  ;;  %v1512_v63 = vmul.f32 0.015625, %v1510_v62 }
 0xba5   : > { %v1514_v0 = vadd.f32 1e-05, %v1512_v63  ;;  %v3741_v63 = vld [vmem:[%s4786_s5 + $0x44] ss:$8 sps:$4 sm:$0xff]  }
 0xba6   : > { %1938 = vmatprep.subr.bf16.mxu1 %v3741_v63 }
 0xba7   : > { %3825 = vrsqrt.f32 %v1514_v0  ;;  %v3739_v0 = vld [vmem:[%s4786_s5 + $0x40] ss:$8 sps:$4 sm:$0xff]  }
 0xbad   : > { %v3824_v1 = vpop.eup %3823 }
 0xbae   : > { %v1517_v2 = vmul.f32 %v3824_v1, %v1501_v37  ;;  %v3744_v1 = vld [vmem:[%s4786_s5 + $0x54] ss:$8 sps:$4 sm:$0xff]  }
 0xbb0   : > { %v1525_v8 = vmul.f32 %v3182_v5, %v1517_v2  ;;  %v3742_v2 = vld [vmem:[%s4786_s5 + $0x50] ss:$8 sps:$4 sm:$0xff]  }
 0xbb1   : > { %v3826_v7 = vpop.eup %3825 }
 0xbb2   : > { %v1518_v9 = vmul.f32 %v3826_v7, %v1502_v18  ;;  %v1533_v12 = vadd.f32 %v3183_v10, %v1525_v8  ;;  %v3745_v7 = vld [vmem:[%s4786_s5 + $0x60] ss:$8 sps:$4 sm:$0xff]   ;;  %v3748_v8 = vld [vmem:[%s4786_s5 + $0x70] ss:$8 sps:$4 sm:$0xff]  }
 0xbb4   : > { %v1526_v11 = vmul.f32 %v3182_v5, %v1518_v9  ;;  %v3747_v5 = vld [vmem:[%s4786_s5 + $0x64] ss:$8 sps:$4 sm:$0xff]   ;;  %v3750_v9 = vld [vmem:[%s4786_s5 + $0x74] ss:$8 sps:$4 sm:$0xff]  }
 0xbb6   : > { %v1534_v14 = vadd.f32 %v3183_v10, %v1526_v11 }
 0xbb8   : > { %v1535_v15 = vpack.c.bf16 %v1534_v14, %v1533_v12 }
 0xbba   : > { %3192 = vmatmul.mubr.msk.bf16.vlgmr.msra.gmra.mrb[24].mxu1 %vm722_vm4, %v1535_v15 }
 0xbbb   : > { %1970 = vmatprep.mubr.bf16.mxu1 %v3935_v3  ;;  %1939 = vmatpush1.bf16.msra.mxu1 %v3739_v0 }
 0xbbc   : > { %1940 = vmatprep.subr.bf16.mxu1 %v3744_v1 }
 0xbbf   : > { %1941 = vmatpush1.bf16.msra.mxu1 %v3742_v2 }
 0xbc0   : > { %1942 = vmatprep.subr.bf16.mxu1 %v3747_v5 }
 0xbc3   : > { %1943 = vmatpush1.bf16.msra.mxu1 %v3745_v7 }
 0xbc4   : > { %1944 = vmatprep.subr.bf16.mxu1 %v3750_v9 }
 0xbc7   : > { %1945 = vmatpush1.bf16.msra.mxu1 %v3748_v8 }
 0xbc8   : > { %3525 = vmatprep.subr.bf16.mxu1 %v3936_v16 }
 0xc8d   : > { %v1633_v32 = vpop.f32.mrb[24].mxu1 }
 0xc8e   : > { %v1634_v33 = vadd.f32 %v1633_v32, %v1549_v26  ;;  %v1635_v34 = vpop.f32.mrb[25].mxu1 }
 0xc8f   : > { %v1636_v35 = vadd.f32 %v1635_v34, %v1553_v29  ;;  %v1637_v36 = vpop.f32.mrb[26].mxu1 }
 0xc90   : > { %v1638_v37 = vadd.f32 %v1637_v36, %v1549_v26  ;;  %v1639_v27 = vpop.f32.mrb[27].mxu1  ;;  %v1642_v38 = vmax.f32 %v1634_v33, 0.0  ;;  %v3222_v36 = vld [vmem:[%s4787_s6 + $0x2] sm:$0x3] }
 0xc91   : > { %v1640_v18 = vadd.f32 %v1639_v27, %v1553_v29  ;;  %v1643_v20 = vmax.f32 %v1636_v35, 0.0  ;;  %v3213_v29 = vld [vmem:[%s4841_s4 + $0x1] ss:$0 sm:$0xff]  ;;  %s3877_s4 = scalar_lea.vmem %s3876_s22, 512 }
 0xc92   : > { %v1644_v28 = vmax.f32 %v1638_v37, 0.0  ;;  %v1888_v37 = vrot.slane %v3222_v36, %v4189_v4 }
 0xc93   : > { %v1645_v39 = vmax.f32 %v1640_v18, 0.0  ;;  %v1892_v18 = vrot.slane %v3222_v36, %v4194_v6 }
 0xc94   : > { %v1646_v40 = vpack.c.bf16 %v1644_v28, %v1642_v38 }
 0xc95   : > { %v1647_v41 = vpack.c.bf16 %v1645_v39, %v1643_v20 }
 0xc97   : > { %1815 = vmatprep.mubr.bf16.mxu0 %v1647_v41 }
 0xc98   : > { %1816 = vmatmul.mubr.bf16.vlgmr.msra.gmra.mrb[20].mxu0 %v1646_v40 }
 0xc99   : > { %3539 = vmatprep.mubr.msk.bf16.mxu0 %vm3937_vm5, %v3936_v16 }
 0xd6b   : > { %v3390_v42 = vpop.f32.mrb[20].mxu0 }
 0xd6c   : > { %v3391_v44 = vpop.f32.mrb[21].mxu0 }
 0xd6d   : > { %v3392_v45 = vadd.f32 %v3391_v44, %v3390_v42  ;;  %v3393_v46 = vpop.f32.mrb[22].mxu0 }
 0xd6e   : > { %v3394_v47 = vpop.f32.mrb[23].mxu0 }
 0xd6f   : > { %v1818_v48 = vadd.f32 %v3392_v45, %v3193_v43  ;;  %v3395_v49 = vadd.f32 %v3394_v47, %v3393_v46 }
 0xd71   : > { %v4434_v50 = vadd.f32 %v1818_v48, %v4329_v25  ;;  %v1821_v51 = vadd.f32 %v3395_v49, %v3193_v43 }
 0xd73   : > { %v4437_v52 = vadd.f32 %v1821_v51, %v4332_v31  ;;  %v1830_v53 = vsel %vm722_vm4, %v4434_v50, 0.0 }
 0xd74   : > { %1831 = vadd.xlane.f32.xlu1 %v1830_v53 }
 0xd75   : > { %v1833_v54 = vsel %vm722_vm4, %v4437_v52, 0.0 }
 0xd76   : > { %1834 = vadd.xlane.f32.xlu0 %v1833_v54 }
 0xe01   : > { %v1832_v55 = vpop.xlane.xlu1 %1831 }
 0xe02   : > { %v1836_v56 = vmul.f32 0.015625, %v1832_v55 }
 0xe03   : > { %v1835_v57 = vpop.xlane.xlu0 %1834 }
 0xe04   : > { %v1838_v58 = vsub.f32 %v4434_v50, %v1836_v56  ;;  %v1837_v59 = vmul.f32 0.015625, %v1835_v57 }
 0xe06   : > { %v1839_v25 = vsub.f32 %v4437_v52, %v1837_v59  ;;  %v1840_v60 = vmul.f32 %v1838_v58, %v1838_v58 }
 0xe08   : > { %v1842_v31 = vsel %vm722_vm4, %v1840_v60, 0.0  ;;  %v1841_v61 = vmul.f32 %v1839_v25, %v1839_v25 }
 0xe09   : > { %1843 = vadd.xlane.f32.xlu1 %v1842_v31 }
 0xe0a   : > { %v1845_v62 = vsel %vm722_vm4, %v1841_v61, 0.0 }
 0xe0b   : > { %1846 = vadd.xlane.f32.xlu0 %v1845_v62 }
 0xe96   : > { %v1844_v10 = vpop.xlane.xlu1 %1843 }
 0xe97   : > { %v1848_v11 = vmul.f32 0.015625, %v1844_v10 }
 0xe98   : > { %v1847_v12 = vpop.xlane.xlu0 %1846 }
 0xe99   : > { %v1850_v14 = vadd.f32 1e-05, %v1848_v11  ;;  %v1849_v15 = vmul.f32 0.015625, %v1847_v12 }
 0xe9b   : > { %3827 = vrsqrt.f32 %v1850_v14  ;;  %v1851_v19 = vadd.f32 1e-05, %v1849_v15 }
 0xe9d   : > { %3829 = vrsqrt.f32 %v1851_v19 }
 0xea5   : > { %v3828_v17 = vpop.eup %3827 }
 0xea6   : > { %v1854_v22 = vmul.f32 %v3828_v17, %v1838_v58 }
 0xea7   : > { %v3830_v13 = vpop.eup %3829 }
 0xea8   : > { %v1862_v23 = vmul.f32 %v3212_v21, %v1854_v22  ;;  %v1855_v26 = vmul.f32 %v3830_v13, %v1839_v25 }
 0xeaa   : > { %v1863_v32 = vmul.f32 %v3212_v21, %v1855_v26  ;;  %v1870_v33 = vadd.f32 %v3213_v29, %v1862_v23 }
 0xeac   : > { %v1871_v34 = vadd.f32 %v3213_v29, %v1863_v32 }
 0xeae   : > { %v1872_v35 = vpack.c.bf16 %v1871_v34, %v1870_v33 }
 0xeb0   : > { %3231 = vmatmul.mubr.msk.bf16.vlgmr.msra.gmra.mrb[28].mxu1 %vm722_vm4, %v1872_v35 }
 0xeb1   : > { %3527 = vmatprep.mubr.msk.bf16.mxu1 %vm3937_vm5, %v3936_v16 }
 0xf83   : > { %v1972_v27 = vpop.f32.mrb[28].mxu1 }
 0xf84   : > { %v1974_v38 = vpop.f32.mrb[29].mxu1  ;;  %v1973_v20 = vadd.f32 %v1972_v27, %v1888_v37 }
 0xf85   : > { %v1976_v28 = vpop.f32.mrb[30].mxu1  ;;  %v1975_v41 = vadd.f32 %v1974_v38, %v1892_v18 }
 0xf86   : > { %v1977_v39 = vadd.f32 %v1976_v28, %v1888_v37  ;;  %v1978_v40 = vpop.f32.mrb[31].mxu1 }
 0xf87   : > { %v1979_v42 = vadd.f32 %v1978_v40, %v1892_v18 }
 0xf88   : > { %v1981_v43 = vpack.c.bf16 %v1977_v39, %v1973_v20 }
 0xf89   : > { %v4486_v44 = vpack.c.bf16 %v1979_v42, %v1975_v41 }
 0xf8a   : > { %2106 = vrot.lane.b32.xlu0 %v1981_v43, %s4846_s23  ;;  %1984 = vrot.lane.b32.xlu1 %v1981_v43, %s4847_s21 }
 0xf8e   : > { %2230 = vrot.lane.b32.xlu0 %v1981_v43, %s4848_s25  ;;  %2104 = vrot.lane.b32.xlu1 %v1981_v43, %s4849_s20 }
 0xf92   : > { %2355 = vrot.lane.b32.xlu0 %v1981_v43, %s4850_s0  ;;  %2232 = vrot.lane.b32.xlu1 %v1981_v43, %s4851_s26 }
 0xf96   : > { %2357 = vrot.lane.b32.xlu1 %v1981_v43, %s4852_s27 }
 0xffc   : > { %v2107_v45 = vpop.permute.xlu0 %2106  ;;  %v1985_v46 = vpop.permute.xlu1 %1984 }
 0xffd   : > { %v2112_v47 = vsel %vm878_vm6, %v2107_v45, 0  ;;  %v1990_v48 = vsel %vm878_vm6, %v1985_v46, 0 }
 0xffe   : > { %3526 = vmatpush3.bf16.xpose.msra.mxu1 %v1990_v48  ;;  %3538 = vmatpush3.bf16.xpose.msra.mxu0 %v2112_v47 }
 0xfff   : > { %3531 = vmatprep.subr.bf16.mxu1 %v3936_v16  ;;  %3549 = vmatprep.subr.bf16.mxu0 %v3936_v16 }
0x1000   : > { %v2105_v49 = vpop.permute.xlu1 %2104  ;;  %v2231_v55 = vpop.permute.xlu0 %2230 }
0x1004   : > { %v2233_v51 = vpop.permute.xlu1 %2232  ;;  %v2356_v57 = vpop.permute.xlu0 %2355 }
0x1005   : > { %v2238_v53 = vsel %vm878_vm6, %v2233_v51, 0  ;;  %3528 = vmatmul.mubr.msk.bf16.vlgmr.msra.gmra.mrb[32].mxu1 %vm878_vm6, %v1981_v43  ;;  %3540 = vmatmul.mubr.msk.bf16.vlgmr.msra.gmra.mrb[24].mxu0 %vm878_vm6, %v2105_v49 }
0x1006   : > { %3532 = vmatpush3.bf16.msra.mxu1 %v4486_v44  ;;  %3550 = vmatpush3.bf16.xpose.msra.mxu0 %v2238_v53 }
0x1007   : > { %3551 = vmatprep.mubr.msk.bf16.mxu0 %vm3937_vm5, %v3936_v16  ;;  %3561 = vmatprep.subr.bf16.mxu0 %v3936_v16 }
0x1008   : > { %3533 = vmatprep.mubr.msk.bf16.mxu1 %vm3937_vm5, %v3936_v16  ;;  %3543 = vmatprep.subr.bf16.mxu1 %v3936_v16  ;;  %v2358_v54 = vpop.permute.xlu1 %2357 }
0x1009   : > { %v2363_v56 = vsel %vm878_vm6, %v2358_v54, 0 }
0x100d   : > { %3552 = vmatmul.mubr.msk.bf16.vlgmr.msra.gmra.mrb[28].mxu0 %vm878_vm6, %v2231_v55 }
0x100e   : > { %3562 = vmatpush3.bf16.xpose.msra.mxu0 %v2363_v56  ;;  %3563 = vmatprep.mubr.msk.bf16.mxu0 %vm3937_vm5, %v3936_v16 }
0x100f   : > { %3573 = vmatprep.subr.bf16.mxu0 %v3936_v16 }
0x1015   : > { %3564 = vmatmul.mubr.msk.bf16.vlgmr.msra.gmra.mrb[32].mxu0 %vm878_vm6, %v2356_v57 }
0x1016   : > { %3581 = vmatprep.mubr.msk.bf16.mxu0 %vm3937_vm5, %v3936_v16 }
0x10d8   : > { %v2026_v58 = vpop.f32.mrb[32].mxu1  ;;  %v2148_v59 = vpop.f32.mrb[24].mxu0 }
0x10d9   : > { %v2033_v25 = vmul.f32 0.25, %v2026_v58  ;;  %v3529_v60 = vpop.f32.mrb[33].mxu1  ;;  %v3541_v31 = vpop.f32.mrb[25].mxu0  ;;  %v2155_v61 = vmul.f32 0.25, %v2148_v59 }
0x10da   : > { %v2029_v62 = vpop.f32.mrb[34].mxu1  ;;  %v2151_v63 = vpop.f32.mrb[26].mxu0 }
0x10db   : > { %v2034_v0 = vmul.f32 0.25, %v2029_v62  ;;  %v2156_v1 = vmul.f32 0.25, %v2151_v63  ;;  %v3530_v2 = vpop.f32.mrb[35].mxu1  ;;  %v3542_v5 = vpop.f32.mrb[27].mxu0  ;;  %v2035_v7 = vsel %vm4213_vm7, %v2033_v25, -1e+30 }
0x10dc   : > { %v2037_v8 = vsel %vm878_vm6, %v2035_v7, -inf  ;;  %v2157_v12 = vsel %vm4213_vm7, %v2155_v61, -1e+30 }
0x10dd   : > { %2038 = vmax.xlane.f32.xlu1 %v2037_v8  ;;  %v2036_v9 = vsel %vm4218_vm8, %v2034_v0, -1e+30  ;;  %v2158_v10 = vsel %vm4218_vm8, %v2156_v1, -1e+30  ;;  %v2159_v22 = vsel %vm878_vm6, %v2157_v12, -inf }
0x10de   : > { %v2040_v11 = vsel %vm878_vm6, %v2036_v9, -inf  ;;  %v2162_v15 = vsel %vm878_vm6, %v2158_v10, -inf }
0x10df   : > { %2041 = vmax.xlane.f32.xlu0 %v2040_v11 }
0x10e0   : > { %v2274_v14 = vpop.f32.mrb[28].mxu0 }
0x10e1   : > { %v2281_v19 = vmul.f32 0.25, %v2274_v14  ;;  %2163 = vmax.xlane.f32.xlu1 %v2162_v15  ;;  %v3553_v17 = vpop.f32.mrb[29].mxu0 }
0x10e2   : > { %v2277_v21 = vpop.f32.mrb[30].mxu0 }
0x10e3   : > { %v2282_v13 = vmul.f32 0.25, %v2277_v21  ;;  %2160 = vmax.xlane.f32.xlu0 %v2159_v22  ;;  %v3554_v23 = vpop.f32.mrb[31].mxu0  ;;  %v2283_v26 = vsel %vm4213_vm7, %v2281_v19, -1e+30 }
0x10e4   : > { %v2285_v32 = vsel %vm878_vm6, %v2283_v26, -inf }
0x10e5   : > { %v2284_v29 = vsel %vm4218_vm8, %v2282_v13, -1e+30 }
0x10e6   : > { %v2288_v33 = vsel %vm878_vm6, %v2284_v29, -inf }
0x10e7   : > { %2286 = vmax.xlane.f32.xlu0 %v2285_v32  ;;  %2289 = vmax.xlane.f32.xlu1 %v2288_v33 }
0x10e8   : > { %v2399_v34 = vpop.f32.mrb[32].mxu0 }
0x10e9   : > { %v2406_v35 = vmul.f32 0.25, %v2399_v34  ;;  %v3565_v36 = vpop.f32.mrb[33].mxu0 }
0x10ea   : > { %v2402_v37 = vpop.f32.mrb[34].mxu0 }
0x10eb   : > { %v2407_v27 = vmul.f32 0.25, %v2402_v37  ;;  %v3566_v18 = vpop.f32.mrb[35].mxu0  ;;  %v2408_v38 = vsel %vm4213_vm7, %v2406_v35, -1e+30 }
0x10ec   : > { %v2410_v28 = vsel %vm878_vm6, %v2408_v38, -inf }
0x10ed   : > { %2411 = vmax.xlane.f32.xlu0 %v2410_v28  ;;  %v2409_v20 = vsel %vm4218_vm8, %v2407_v27, -1e+30 }
0x10ee   : > { %v2413_v39 = vsel %vm878_vm6, %v2409_v20, -inf }
0x10ef   : > { %2414 = vmax.xlane.f32.xlu1 %v2413_v39 }
0x116a   : > { %v2039_v40 = vpop.xlane.xlu1 %2038 }
0x116b   : > { %v2043_v41 = vsub.f32 %v2035_v7, %v2039_v40 }
0x116c   : > { %v2042_v42 = vpop.xlane.xlu0 %2041 }
0x116d   : > { %v2045_v43 = vmul.f32 1.442695, %v2043_v41  ;;  %v2044_v45 = vsub.f32 %v2036_v9, %v2042_v42 }
0x116e   : > { %v2164_v46 = vpop.xlane.xlu1 %2163 }
0x116f   : > { %3831 = vpow2.f32 %v2045_v43  ;;  %v2047_v47 = vmul.f32 1.442695, %v2044_v45  ;;  %v2166_v48 = vsub.f32 %v2158_v10, %v2164_v46 }
0x1170   : > { %v2161_v24 = vpop.xlane.xlu0 %2160 }
0x1171   : > { %3833 = vpow2.f32 %v2047_v47  ;;  %v2169_v49 = vmul.f32 1.442695, %v2166_v48  ;;  %v2165_v51 = vsub.f32 %v2157_v12, %v2161_v24 }
0x1173   : > { %3835 = vpow2.f32 %v2169_v49  ;;  %v2167_v53 = vmul.f32 1.442695, %v2165_v51 }
0x1174   : > { %v2287_v30 = vpop.xlane.xlu0 %2286  ;;  %v2290_v54 = vpop.xlane.xlu1 %2289 }
0x1175   : > { %3837 = vpow2.f32 %v2167_v53  ;;  %v2291_v55 = vsub.f32 %v2283_v26, %v2287_v30  ;;  %v2292_v56 = vsub.f32 %v2284_v29, %v2290_v54 }
0x1177   : > { %v2293_v57 = vmul.f32 1.442695, %v2291_v55  ;;  %v2295_v58 = vmul.f32 1.442695, %v2292_v56 }
0x1179   : > { %v3832_v59 = vpop.eup %3831  ;;  %3839 = vpow2.f32 %v2293_v57 }
0x117a   : > { %3841 = vpow2.f32 %v2295_v58  ;;  %v2412_v25 = vpop.xlane.xlu0 %2411  ;;  %v2049_v60 = vsel %vm878_vm6, %v3832_v59, 0.0 }
0x117b   : > { %v3834_v31 = vpop.eup %3833  ;;  %v2416_v61 = vsub.f32 %v2408_v38, %v2412_v25  ;;  %2050 = vadd.xlane.f32.xlu0 %v2049_v60  ;;  %v3751_v60 = vld [vmem:[%s4788_s7 + $0x20] sm:$0xff]  }
0x117c   : > { %v2052_v62 = vsel %vm878_vm6, %v3834_v31, 0.0  ;;  %v2415_v14 = vpop.xlane.xlu1 %2414  ;;  %3574 = vmatpush3.bf16.msra.mxu0 %v3751_v60  ;;  %v3767_v60 = vld [vmem:[%s4794_s13 + $0xc0] sm:$0xff]  }
0x117d   : > { %v3836_v63 = vpop.eup %3835  ;;  %v2418_v0 = vmul.f32 1.442695, %v2416_v61  ;;  %2053 = vadd.xlane.f32.xlu1 %v2052_v62  ;;  %v2417_v15 = vsub.f32 %v2409_v20, %v2415_v14  ;;  %v3752_v62 = vld [vmem:[%s4788_s7 + $0x28] sm:$0xff]   ;;  %3575 = vmatprep.subr.bf16.mxu0 %v3936_v16 }
0x117e   : > { %v2174_v5 = vsel %vm878_vm6, %v3836_v63, 0.0 }
0x117f   : > { %v3838_v1 = vpop.eup %3837  ;;  %3843 = vpow2.f32 %v2418_v0  ;;  %v2420_v19 = vmul.f32 1.442695, %v2417_v15 }
0x1180   : > { %v2171_v2 = vsel %vm878_vm6, %v3838_v1, 0.0  ;;  %3576 = vmatpush3.bf16.msra.mxu0 %v3752_v62  ;;  %v3770_v62 = vld [vmem:[%s4794_s13 + $0x88] sm:$0xff]  }
0x1181   : > { %2172 = vadd.xlane.f32.xlu0 %v2171_v2  ;;  %2175 = vadd.xlane.f32.xlu1 %v2174_v5  ;;  %3845 = vpow2.f32 %v2420_v19 }
0x1182   : > { %3577 = vmatprep.subr.bf16.mxu0 %v3936_v16 }
0x1183   : > { %v3840_v7 = vpop.eup %3839 }
0x1184   : > { %v3842_v8 = vpop.eup %3841  ;;  %v2297_v9 = vsel %vm878_vm6, %v3840_v7, 0.0 }
0x1185   : > { %2298 = vadd.xlane.f32.xlu0 %v2297_v9  ;;  %v2300_v10 = vsel %vm878_vm6, %v3842_v8, 0.0 }
0x1186   : > { %2301 = vadd.xlane.f32.xlu1 %v2300_v10 }
0x1189   : > { %v3844_v11 = vpop.eup %3843 }
0x118a   : > { %v2422_v12 = vsel %vm878_vm6, %v3844_v11, 0.0 }
0x118b   : > { %2423 = vadd.xlane.f32.xlu0 %v2422_v12  ;;  %v3846_v17 = vpop.eup %3845 }
0x118c   : > { %v2425_v21 = vsel %vm878_vm6, %v3846_v17, 0.0 }
0x1197   : > { %2308 = vrot.lane.b32.xlu1 %v4486_v44, %s4848_s25  ;;  %s3341_s25 = sshll.u32 %s4069_s1, 8 }
0x11a1   : > { %2183 = vrot.lane.b32.xlu0 %v4486_v44, %s4849_s20 }
0x11bb   : > { %2426 = vadd.xlane.f32.xlu1 %v2425_v21 }
0x11cc   : > { %2433 = vrot.lane.b32.xlu1 %v4486_v44, %s4850_s0 }
0x1208   : > { %v2051_v22 = vpop.xlane.xlu0 %2050 }
0x1209   : > { %3847 = vrcp.f32 %v2051_v22 }
0x120a   : > { %v2054_v13 = vpop.xlane.xlu1 %2053 }
0x120b   : > { %3849 = vrcp.f32 %v2054_v13 }
0x120e   : > { %v2173_v23 = vpop.xlane.xlu0 %2172  ;;  %v2176_v26 = vpop.xlane.xlu1 %2175 }
0x120f   : > { %3851 = vrcp.f32 %v2173_v23 }
0x1210   : > { %3853 = vrcp.f32 %v2176_v26 }
0x1212   : > { %v2299_v32 = vpop.xlane.xlu0 %2298 }
0x1213   : > { %v3848_v29 = vpop.eup %3847  ;;  %v2302_v33 = vpop.xlane.xlu1 %2301  ;;  %3855 = vrcp.f32 %v2299_v32 }
0x1214   : > { %v2057_v35 = vmul.f32 %v3848_v29, %v3832_v59  ;;  %3857 = vrcp.f32 %v2302_v33 }
0x1215   : > { %v3850_v34 = vpop.eup %3849 }
0x1216   : > { %v2058_v36 = vmul.f32 %v3850_v34, %v3834_v31 }
0x1217   : > { %v2309_v42 = vpop.permute.xlu1 %2308 }
0x1218   : > { %v2424_v37 = vpop.xlane.xlu0 %2423  ;;  %v2059_v27 = vpack.c.bf16 %v2058_v36, %v2057_v35 }
0x1219   : > { %v3852_v18 = vpop.eup %3851  ;;  %3859 = vrcp.f32 %v2424_v37 }
0x121a   : > { %v3854_v44 = vpop.eup %3853  ;;  %3534 = vmatmul.mubr.msk.bf16.vlgmr.msra.gmra.mrb[36].mxu1 %vm878_vm6, %v2059_v27  ;;  %v2179_v38 = vmul.f32 %v3852_v18, %v3838_v1  ;;  %v3249_v27 = vld [vmem:[%s4789_s8 + $0x1] ss:$0 sm:$0xff] }
0x121b   : > { %3545 = vmatprep.mubr.msk.bf16.mxu1 %vm3937_vm5, %v3936_v16  ;;  %v2180_v28 = vmul.f32 %v3854_v44, %v3836_v63  ;;  %v3753_v63 = vld [vmem:[%s4788_s7 + $0x30] sm:$0xff]  }
0x121c   : > { %v2184_v20 = vpop.permute.xlu0 %2183  ;;  %3578 = vmatpush3.bf16.msra.mxu0 %v3753_v63  ;;  %v3772_v63 = vld [vmem:[%s4794_s13 + $0x90] sm:$0xff]  }
0x121d   : > { %3544 = vmatpush3.bf16.msra.mxu1 %v2184_v20  ;;  %v3856_v39 = vpop.eup %3855  ;;  %v2181_v40 = vpack.c.bf16 %v2180_v28, %v2179_v38  ;;  %3579 = vmatprep.subr.bf16.mxu0 %v3936_v16 }
0x121e   : > { %3555 = vmatprep.subr.bf16.mxu1 %v3936_v16  ;;  %v3858_v41 = vpop.eup %3857  ;;  %v2305_v43 = vmul.f32 %v3856_v39, %v3840_v7  ;;  %v3754_v7 = vld [vmem:[%s4788_s7 + $0x38] sm:$0xff]  }
0x121f   : > { %v2306_v45 = vmul.f32 %v3858_v41, %v3842_v8 }
0x1220   : > { %3580 = vmatpush3.bf16.msra.mxu0 %v3754_v7  ;;  %v3777_v7 = vld [vmem:[%s4794_s13 + $0xe8] sm:$0xff]  }
0x1221   : > { %v2307_v46 = vpack.c.bf16 %v2306_v45, %v2305_v43  ;;  %3417 = vmatprep.subr.bf16.mxu0 %v3767_v60 }
0x1222   : > { %3546 = vmatmul.mubr.msk.bf16.vlgmr.msra.gmra.mrb[40].mxu1 %vm878_vm6, %v2181_v40 }
0x1223   : > { %3556 = vmatpush3.bf16.msra.mxu1 %v2309_v42  ;;  %3557 = vmatprep.mubr.msk.bf16.mxu1 %vm3937_vm5, %v3936_v16  ;;  %v3860_v24 = vpop.eup %3859 }
0x1224   : > { %3567 = vmatprep.subr.bf16.mxu1 %v3936_v16  ;;  %v2430_v51 = vmul.f32 %v3860_v24, %v3844_v11 }
0x122a   : > { %3558 = vmatmul.mubr.msk.bf16.vlgmr.msra.gmra.mrb[44].mxu1 %vm878_vm6, %v2307_v46 }
0x122b   : > { %3569 = vmatprep.mubr.msk.bf16.mxu1 %vm3937_vm5, %v3936_v16 }
0x1248   : > { %v2427_v47 = vpop.xlane.xlu1 %2426 }
0x1249   : > { %3861 = vrcp.f32 %v2427_v47 }
0x124c   : > { %v2434_v48 = vpop.permute.xlu1 %2433 }
0x124d   : > { %3568 = vmatpush3.bf16.msra.mxu1 %v2434_v48 }
0x1253   : > { %v3862_v49 = vpop.eup %3861 }
0x1254   : > { %v2431_v53 = vmul.f32 %v3862_v49, %v3846_v17 }
0x1256   : > { %v2432_v30 = vpack.c.bf16 %v2431_v53, %v2430_v51 }
0x1258   : > { %3570 = vmatmul.mubr.msk.bf16.vlgmr.msra.gmra.mrb[48].mxu1 %vm878_vm6, %v2432_v30  ;;  %v3757_v30 = vld [vmem:[%s4792_s11 + $0x44] ss:$8 sps:$4 sm:$0xff]  }
0x1259   : > { %2742 = vmatprep.mubr.bf16.mxu1 %v3935_v3  ;;  %2710 = vmatprep.subr.bf16.mxu1 %v3757_v30 }
0x12ed   : > { %v2097_v54 = vpop.f32.mrb[36].mxu1 }
0x12ee   : > { %v3535_v55 = vpop.f32.mrb[37].mxu1 }
0x12ef   : > { %v2100_v56 = vpop.f32.mrb[38].mxu1  ;;  %v3760_v55 = vld [vmem:[%s4792_s11 + $0x54] ss:$8 sps:$4 sm:$0xff]  }
0x12f0   : > { %v3536_v57 = vpop.f32.mrb[39].mxu1 }
0x12f1   : > { %v3763_v57 = vld [vmem:[%s4792_s11 + $0x64] ss:$8 sps:$4 sm:$0xff]  }
0x12f5   : > { %v2223_v58 = vpop.f32.mrb[40].mxu1 }
0x12f6   : > { %v3547_v59 = vpop.f32.mrb[41].mxu1 }
0x12f7   : > { %v2226_v25 = vpop.f32.mrb[42].mxu1  ;;  %v3764_v59 = vld [vmem:[%s4792_s11 + $0x70] ss:$8 sps:$4 sm:$0xff]  }
0x12f8   : > { %v3680_v31 = vpack.i.bf16 %v2226_v25, %v2223_v58  ;;  %v3548_v61 = vpop.f32.mrb[43].mxu1  ;;  %v3761_v58 = vld [vmem:[%s4792_s11 + $0x60] ss:$8 sps:$4 sm:$0xff]   ;;  %v3766_v25 = vld [vmem:[%s4792_s11 + $0x74] ss:$8 sps:$4 sm:$0xff]  }
0x12f9   : > { %v3769_v61 = vld [vmem:[%s4794_s13 + $0xc8] sm:$0xff]  }
0x12fa   : > { %3681 = vrot.lane.b32.xlu0 %v3680_v31, %s4852_s27  ;;  %v3768_v31 = vld [vmem:[%s4794_s13 + $0x80] sm:$0xff]   ;;  %s4738_s27 = scalar_lea.hbm %s4800_s19, %s3341_s25 }
0x12fd   : > { %v2348_v3 = vpop.f32.mrb[44].mxu1 }
0x12fe   : > { %v3559_v0 = vpop.f32.mrb[45].mxu1 }
0x12ff   : > { %v2351_v1 = vpop.f32.mrb[46].mxu1  ;;  %v3773_v0 = vld [vmem:[%s4794_s13 + $0xd8] sm:$0xff]  }
0x1300   : > { %v3685_v2 = vpack.i.bf16 %v2351_v1, %v2348_v3  ;;  %v3560_v5 = vpop.f32.mrb[47].mxu1  ;;  %v3771_v3 = vld [vmem:[%s4794_s13 + $0xd0] sm:$0xff]   ;;  %v3774_v1 = vld [vmem:[%s4794_s13 + $0x98] sm:$0xff]  }
0x1301   : > { %v3776_v5 = vld [vmem:[%s4794_s13 + $0xa0] sm:$0xff]  }
0x1302   : > { %3686 = vrot.lane.b32.xlu1 %v3685_v2, %s4851_s26  ;;  %v3775_v2 = vld [vmem:[%s4794_s13 + $0xe0] sm:$0xff]  }
0x132b   : > { %v2473_v8 = vpop.f32.mrb[48].mxu1 }
0x132c   : > { %v3571_v9 = vpop.f32.mrb[49].mxu1 }
0x132d   : > { %v2476_v10 = vpop.f32.mrb[50].mxu1 }
0x132e   : > { %v3690_v11 = vpack.i.bf16 %v2476_v10, %v2473_v8  ;;  %v3572_v12 = vpop.f32.mrb[51].mxu1 }
0x1330   : > { %3691 = vrot.lane.b32.xlu0 %v3690_v11, %s4846_s23  ;;  %s593_s23 = sand.u32 1, %s3925_s30  }
0x1331   : > { %s3149_s26 = sshll.u32 %s593_s23, 4 }
0x1332   : > { %s595_s2 = scalar_lea.vmem [#allocation2], %s3149_s26  ;;  %s4740_s26 = scalar_lea.sflag [#allocation3], %s593_s23 }
0x1333   : > { %s3083_s21 = sshll.u32 %s595_s2, 4  ;;  %s4733_s21 = int_to_ptr.vmem [resolvable:$true] %s3083_s21 }
0x1334   : > { %s3871_s1 = scalar_lea.vmem %s4733_s21, 256  ;;  %p3878_p0 = scmp.lt.s32.totalorder %s4733_s21, %s3876_s22 }
0x1335   : > { %p3872_p11 = scmp.ne.s32.totalorder %s4733_s21, %s3871_s1  ;;  %p3879_p1 = scmp.lt.s32.totalorder %s3877_s4, %s3871_s1 }
0x1337   : > { %p3873_p12 = pnand %p3872_p11, %p4086_p5  ;;  %p3880_p2 = por %p3879_p1, %p3878_p0 }
0x1339   : > { %p3874_p13 = pneg %p3873_p12 }
0x133b   : > { %p3881_p3 = pnand %p3880_p2, %p3874_p13 }
0x136c   : > { %v3682_v14 = vpop.permute.xlu0 %3681 }
0x136d   : > { %v3684_v19 = vunpack.i.h.bf16 %v3682_v14  ;;  %v3683_v17 = vunpack.i.l.bf16 %v3682_v14 }
0x136f   : > { %v2505_v23 = vsel %vm878_vm6, %v2100_v56, %v3684_v19  ;;  %v2504_v26 = vsel %vm878_vm6, %v2097_v54, %v3683_v17  ;;  %v3755_v54 = vld [vmem:[%s4792_s11 + $0x40] ss:$8 sps:$4 sm:$0xff]   ;;  %v3758_v56 = vld [vmem:[%s4792_s11 + $0x50] ss:$8 sps:$4 sm:$0xff]  }
0x1370   : > { %2711 = vmatpush1.bf16.msra.mxu1 %v3755_v54  ;;  %v3257_v19 = vld [vmem:[%s4790_s9 + $0x1] ss:$0 sm:$0xff] }
0x1371   : > { %2712 = vmatprep.subr.bf16.mxu1 %v3760_v55 }
0x1374   : > { %v3687_v15 = vpop.permute.xlu1 %3686  ;;  %2713 = vmatpush1.bf16.msra.mxu1 %v3758_v56 }
0x1375   : > { %v3689_v21 = vunpack.i.h.bf16 %v3687_v15  ;;  %v3688_v22 = vunpack.i.l.bf16 %v3687_v15  ;;  %2714 = vmatprep.subr.bf16.mxu1 %v3763_v57 }
0x1377   : > { %v2507_v33 = vsel %vm1399_vm9, %v2505_v23, %v3689_v21  ;;  %v2506_v34 = vsel %vm1399_vm9, %v2504_v26, %v3688_v22  ;;  %v3258_v23 = vld [vmem:[%s4791_s10 + $0x1] ss:$0 sm:$0xff] }
0x1378   : > { %2715 = vmatpush1.bf16.msra.mxu1 %v3761_v58 }
0x1379   : > { %2716 = vmatprep.subr.bf16.mxu1 %v3766_v25 }
0x137c   : > { %2717 = vmatpush1.bf16.msra.mxu1 %v3764_v59 }
0x137d   : > { %3585 = vmatprep.subr.bf16.mxu1 %v3936_v16 }
0x13a2   : > { %v3692_v13 = vpop.permute.xlu0 %3691 }
0x13a3   : > { %v3694_v29 = vunpack.i.h.bf16 %v3692_v13  ;;  %v3693_v32 = vunpack.i.l.bf16 %v3692_v13 }
0x13a5   : > { %v2508_v35 = vsel %vm1402_vm10, %v2506_v34, %v3693_v32  ;;  %v2509_v36 = vsel %vm1402_vm10, %v2507_v33, %v3694_v29  ;;  %v3778_v34 = vld [vmem:[%s4794_s13 + $0xa8] sm:$0xff]  }
0x13a6   : > { %v2510_v37 = vpack.c.bf16 %v2509_v36, %v2508_v35  ;;  %v3779_v35 = vld [vmem:[%s4794_s13 + $0xf0] sm:$0xff]  }
0x13a7   : > { %v3780_v36 = vld [vmem:[%s4794_s13 + $0xb0] sm:$0xff]  }
0x13a8   : > { %3582 = vmatmul.mubr.msk.bf16.vlgmr.msra.gmra.mrb[36].mxu0 %vm722_vm4, %v2510_v37  ;;  %v3781_v37 = vld [vmem:[%s4794_s13 + $0xf8] sm:$0xff]  }
0x13a9   : > { %3418 = vmatpush3.bf16.msra.mxu0 %v3768_v31 }
0x13aa   : > { %3419 = vmatprep.subr.bf16.mxu0 %v3769_v61 }
0x13ad   : > { %3420 = vmatpush3.bf16.msra.mxu0 %v3770_v62 }
0x13ae   : > { %3421 = vmatprep.subr.bf16.mxu0 %v3771_v3 }
0x13b1   : > { %3422 = vmatpush3.bf16.msra.mxu0 %v3772_v63 }
0x13b2   : > { %3423 = vmatprep.subr.bf16.mxu0 %v3773_v0 }
0x13b5   : > { %3424 = vmatpush3.bf16.msra.mxu0 %v3774_v1 }
0x13b6   : > { %3425 = vmatprep.subr.bf16.mxu0 %v3775_v2 }
0x13b9   : > { %3426 = vmatpush3.bf16.msra.mxu0 %v3776_v5 }
0x13ba   : > { %3427 = vmatprep.subr.bf16.mxu0 %v3777_v7 }
0x13bd   : > { %3428 = vmatpush3.bf16.msra.mxu0 %v3778_v34 }
0x13be   : > { %3429 = vmatprep.subr.bf16.mxu0 %v3779_v35 }
0x13c1   : > { %3430 = vmatpush3.bf16.msra.mxu0 %v3780_v36  ;;  %v3329_v36 = vld [vmem:[%s4799_s18] ss:$0 sm:$0xff] }
0x13c2   : > { %3431 = vmatprep.subr.bf16.mxu0 %v3781_v37 }
0x147b   : > { %v2589_v18 = vpop.f32.mrb[36].mxu0 }
0x147c   : > { %v2590_v44 = vadd.f32 %v3249_v27, %v2589_v18  ;;  %v3583_v38 = vpop.f32.mrb[37].mxu0  ;;  %v3267_v18 = vld [vmem:[%s4793_s12 + $0x2] sm:$0x3] }
0x147d   : > { %v2592_v28 = vpop.f32.mrb[38].mxu0  ;;  %v2664_v38 = vrot.slane %v3267_v18, %v4194_v6 }
0x147e   : > { %v4597_v20 = vadd.f32 %v2590_v44, %v4434_v50  ;;  %v2593_v39 = vadd.f32 %v3249_v27, %v2592_v28  ;;  %v3584_v40 = vpop.f32.mrb[39].mxu0  ;;  %v3782_v27 = vld [vmem:[%s4794_s13 + $0xb8] sm:$0xff]   ;;  %v2660_v44 = vrot.slane %v3267_v18, %v4189_v4  ;;  %v3310_v4 = vld [vmem:[%s4795_s14 + $0x1] ss:$0 sm:$0xff] }
0x147f   : > { %3432 = vmatpush3.bf16.msra.mxu0 %v3782_v27 }
0x1480   : > { %v4600_v41 = vadd.f32 %v2593_v39, %v4437_v52  ;;  %v2602_v42 = vsel %vm722_vm4, %v4597_v20, 0.0 }
0x1481   : > { %2603 = vadd.xlane.f32.xlu1 %v2602_v42 }
0x1482   : > { %v2605_v43 = vsel %vm722_vm4, %v4600_v41, 0.0 }
0x1483   : > { %2606 = vadd.xlane.f32.xlu0 %v2605_v43 }
0x150e   : > { %v2604_v45 = vpop.xlane.xlu1 %2603 }
0x150f   : > { %v2608_v46 = vmul.f32 0.015625, %v2604_v45 }
0x1510   : > { %v2607_v47 = vpop.xlane.xlu0 %2606 }
0x1511   : > { %v2610_v48 = vsub.f32 %v4597_v20, %v2608_v46  ;;  %v2609_v50 = vmul.f32 0.015625, %v2607_v47 }
0x1513   : > { %v2611_v24 = vsub.f32 %v4600_v41, %v2609_v50  ;;  %v2612_v49 = vmul.f32 %v2610_v48, %v2610_v48 }
0x1515   : > { %v2614_v52 = vsel %vm722_vm4, %v2612_v49, 0.0  ;;  %v2613_v51 = vmul.f32 %v2611_v24, %v2611_v24 }
0x1516   : > { %2615 = vadd.xlane.f32.xlu0 %v2614_v52 }
0x1517   : > { %v2617_v53 = vsel %vm722_vm4, %v2613_v51, 0.0 }
0x1518   : > { %2618 = vadd.xlane.f32.xlu1 %v2617_v53 }
0x15a3   : > { %v2616_v8 = vpop.xlane.xlu0 %2615 }
0x15a4   : > { %v2620_v9 = vmul.f32 0.015625, %v2616_v8  ;;  %v3784_v8 = vld [vmem:[%s4798_s17 + $0x8] sm:$0xff]  }
0x15a5   : > { %v2619_v10 = vpop.xlane.xlu1 %2618 }
0x15a6   : > { %v2622_v11 = vadd.f32 1e-05, %v2620_v9  ;;  %v2621_v12 = vmul.f32 0.015625, %v2619_v10  ;;  %v3785_v9 = vld [vmem:[%s4798_s17 + $0x10] sm:$0xff]   ;;  %v3786_v10 = vld [vmem:[%s4798_s17 + $0x18] sm:$0xff]  }
0x15a8   : > { %3863 = vrsqrt.f32 %v2622_v11  ;;  %v2623_v14 = vadd.f32 1e-05, %v2621_v12 }
0x15aa   : > { %3865 = vrsqrt.f32 %v2623_v14 }
0x15b2   : > { %v3864_v15 = vpop.eup %3863 }
0x15b3   : > { %v2626_v17 = vmul.f32 %v3864_v15, %v2610_v48 }
0x15b4   : > { %v3866_v21 = vpop.eup %3865 }
0x15b5   : > { %v2634_v22 = vmul.f32 %v3257_v19, %v2626_v17  ;;  %v2627_v13 = vmul.f32 %v3866_v21, %v2611_v24 }
0x15b7   : > { %v2635_v26 = vmul.f32 %v3257_v19, %v2627_v13  ;;  %v2642_v29 = vadd.f32 %v3258_v23, %v2634_v22  ;;  %v3327_v22 = vld [vmem:[%s4796_s15] ss:$0 sm:$0xff] }
0x15b9   : > { %v2643_v32 = vadd.f32 %v3258_v23, %v2635_v26 }
0x15bb   : > { %v2644_v33 = vpack.c.bf16 %v2643_v32, %v2642_v29  ;;  %v3328_v29 = vld [vmem:[%s4797_s16] ss:$0 sm:$0xff] }
0x15bd   : > { %3276 = vmatmul.mubr.msk.bf16.vlgmr.msra.gmra.mrb[52].mxu1 %vm722_vm4, %v2644_v33 }
0x15be   : > { %3593 = vmatprep.mubr.msk.bf16.mxu1 %vm3937_vm5, %v3936_v16 }
0x1690   : > { %v2744_v28 = vpop.f32.mrb[52].mxu1 }
0x1691   : > { %v2745_v39 = vadd.f32 %v2744_v28, %v2660_v44  ;;  %v2746_v40 = vpop.f32.mrb[53].mxu1 }
0x1692   : > { %v2747_v42 = vadd.f32 %v2746_v40, %v2664_v38  ;;  %v2748_v43 = vpop.f32.mrb[54].mxu1 }
0x1693   : > { %v2749_v45 = vadd.f32 %v2748_v43, %v2660_v44  ;;  %v2750_v46 = vpop.f32.mrb[55].mxu1  ;;  %v2753_v48 = vmax.f32 %v2745_v39, 0.0 }
0x1694   : > { %v2751_v47 = vadd.f32 %v2750_v46, %v2664_v38  ;;  %v2754_v24 = vmax.f32 %v2747_v42, 0.0 }
0x1695   : > { %v2755_v50 = vmax.f32 %v2749_v45, 0.0 }
0x1696   : > { %v2756_v49 = vmax.f32 %v2751_v47, 0.0 }
0x1697   : > { %v2757_v52 = vpack.c.bf16 %v2755_v50, %v2753_v48 }
0x1698   : > { %v2758_v51 = vpack.c.bf16 %v2756_v49, %v2754_v24 }
0x169a   : > { %2928 = vmatprep.mubr.bf16.mxu0 %v2758_v51 }
0x169b   : > { %2929 = vmatmul.mubr.bf16.vlgmr.msra.gmra.mrb[40].mxu0 %v2757_v52 }
0x176e   : > { %v3433_v53 = vpop.f32.mrb[40].mxu0 }
0x176f   : > { %v3434_v6 = vpop.f32.mrb[41].mxu0 }
0x1770   : > { %v3435_v30 = vadd.f32 %v3434_v6, %v3433_v53  ;;  %v3436_v54 = vpop.f32.mrb[42].mxu0 }
0x1771   : > { %v3437_v55 = vpop.f32.mrb[43].mxu0 }
0x1772   : > { %v2931_v56 = vadd.f32 %v3435_v30, %v3310_v4  ;;  %v3438_v57 = vadd.f32 %v3437_v55, %v3436_v54 }
0x1774   : > { %v2934_v58 = vadd.f32 %v3438_v57, %v3310_v4  ;;  %v2937_v59 = vadd.f32 %v2931_v56, %v4597_v20 }
0x1776   : > { %v2941_v25 = vsel %vm722_vm4, %v2937_v59, 0.0  ;;  %v2938_v60 = vadd.f32 %v2934_v58, %v4600_v41  ;;  %v3783_v41 = vld [vmem:[%s4798_s17] sm:$0xff]  }
0x1777   : > { %2942 = vadd.xlane.f32.xlu0 %v2941_v25  ;;  %3586 = vmatpush3.bf16.msra.mxu1 %v3783_v41 }
0x1778   : > { %v2944_v31 = vsel %vm722_vm4, %v2938_v60, 0.0  ;;  %3587 = vmatprep.subr.bf16.mxu1 %v3936_v16 }
0x1779   : > { %2945 = vadd.xlane.f32.xlu1 %v2944_v31 }
0x177b   : > { %3588 = vmatpush3.bf16.msra.mxu1 %v3784_v8 }
0x177c   : > { %3589 = vmatprep.subr.bf16.mxu1 %v3936_v16 }
0x177f   : > { %3590 = vmatpush3.bf16.msra.mxu1 %v3785_v9 }
0x1780   : > { %3591 = vmatprep.subr.bf16.mxu1 %v3936_v16 }
0x1783   : > { %3592 = vmatpush3.bf16.msra.mxu1 %v3786_v10 }
0x1804   : > { %v2943_v61 = vpop.xlane.xlu0 %2942 }
0x1805   : > { %v2947_v62 = vmul.f32 0.015625, %v2943_v61 }
0x1806   : > { %v2946_v3 = vpop.xlane.xlu1 %2945 }
0x1807   : > { %v2949_v63 = vsub.f32 %v2937_v59, %v2947_v62  ;;  %v2948_v0 = vmul.f32 0.015625, %v2946_v3 }
0x1809   : > { %v2950_v1 = vsub.f32 %v2938_v60, %v2948_v0  ;;  %v2951_v2 = vmul.f32 %v2949_v63, %v2949_v63 }
0x180b   : > { %v2953_v5 = vsel %vm722_vm4, %v2951_v2, 0.0  ;;  %v2952_v7 = vmul.f32 %v2950_v1, %v2950_v1 }
0x180c   : > { %2954 = vadd.xlane.f32.xlu0 %v2953_v5 }
0x180d   : > { %v2956_v20 = vsel %vm722_vm4, %v2952_v7, 0.0 }
0x180e   : > { %2957 = vadd.xlane.f32.xlu1 %v2956_v20 }
0x1899   : > { %v2955_v11 = vpop.xlane.xlu0 %2954 }
0x189a   : > { %v2959_v12 = vmul.f32 0.015625, %v2955_v11 }
0x189b   : > { %v2958_v14 = vpop.xlane.xlu1 %2957 }
0x189c   : > { %v2961_v15 = vadd.f32 1e-05, %v2959_v12  ;;  %v2960_v19 = vmul.f32 0.015625, %v2958_v14 }
0x189e   : > { %3867 = vrsqrt.f32 %v2961_v15  ;;  %v2962_v17 = vadd.f32 1e-05, %v2960_v19 }
0x18a0   : > { %3869 = vrsqrt.f32 %v2962_v17 }
0x18a8   : > { %v3868_v21 = vpop.eup %3867 }
0x18a9   : > { %v2965_v16 = vmul.f32 %v3868_v21, %v2949_v63 }
0x18aa   : > { %v3870_v13 = vpop.eup %3869 }
0x18ab   : > { %v2973_v23 = vmul.f32 %v3327_v22, %v2965_v16  ;;  %v2966_v26 = vmul.f32 %v3870_v13, %v2950_v1 }
0x18ad   : > { %v2974_v32 = vmul.f32 %v3327_v22, %v2966_v26  ;;  %v2981_v33 = vadd.f32 %v3328_v29, %v2973_v23 }
0x18af   : > { %v2982_v34 = vadd.f32 %v3328_v29, %v2974_v32 }
0x18b1   : > { %v2983_v35 = vpack.c.bf16 %v2982_v34, %v2981_v33 }
0x18b3   : > { %3594 = vmatmul.mubr.msk.bf16.vlgmr.msra.gmra.mrb[56].mxu1 %vm722_vm4, %v2983_v35 }
0x1986   : > { %v3060_v37 = vpop.f32.mrb[56].mxu1 }
0x1987   : > { %v3061_v27 = vadd.f32 %v3329_v36, %v3060_v37  ;;  %v3595_v18 = vpop.f32.mrb[57].mxu1 }
0x1988   : > { %v3063_v44 = vpop.f32.mrb[58].mxu1 }
0x1989   : > { %3067 = vst [vmem:[%s595_s2] sm:$0xff] %v3061_v27  ;;  %v3064_v38 = vadd.f32 %v3329_v36, %v3063_v44  ;;  %v3596_v28 = vpop.f32.mrb[59].mxu1 }
0x198b   : > { %3068 = vst [vmem:[%s595_s2 + $0x8] sm:$0xff] %v3064_v38 }
0x198c   : > { %3884 = shalt.err (!%p3881_p3)
}
0x198d   : > { %s3885_s23 = scalar_lea.hbm %s4738_s27, 256  ;;  %s3889_s20 = scalar_lea.hbm %s4800_s19, 512 }
0x198e   : > { %p3886_p4 = scmp.ne.s32.totalorder %s4738_s27, %s3885_s23  ;;  %p3890_p9 = scmp.lt.u32.totalorder %s4738_s27, %s4800_s19 }
0x198f   : > { %p3891_p10 = scmp.lt.u32.totalorder %s3889_s20, %s3885_s23  ;;  %p3893_p12 = scmp.lt.u32.totalorder %s3885_s23, %s4738_s27 }
0x1990   : > { %p3887_p7 = pnand %p3886_p4, %p4086_p5 }
0x1991   : > { %p3892_p11 = por %p3891_p10, %p3890_p9 }
0x1992   : > { %p3888_p8 = pneg %p3887_p7 }
0x1993   : > { %p3894_p13 = por %p3893_p12, %p3892_p11 }
0x1995   : > { %p3895_p0 = pnand %p3894_p13, %p3888_p8 }
0x1997   : > { %3898 = shalt.err (!%p3895_p0)
}
0x1998   : > { %s3946_s4 = smov 128   ;;  %s3947_s1 = smov 8  }
0x1999   : > { %3613 = dma.vmem_to_hbm [thread:$0]  (%p4086_p5), %s4733_s21, 256, %s4738_s27, %s4740_s26, %s3946_s4, %s3946_s4, %s3947_s1  }
0x199a PF: > { %s4853_s22 = sld [smem:[#allocation7_spill]]  ;;  %s4854_s2 = sld [smem:[#allocation5_spill]] }
0x19a0   : > { %p3619_p1 = scmp.ge.s32.totalorder %s4853_s22, 2  ;;  %s3098_s0 = sand.u32 1, %s4854_s2  }
0x19a1   : > { %s3099_s23 = scalar_lea.sflag [#allocation3], %s3098_s0 }
0x19a2   : > { %p3616_p2 = pnand %p3619_p1, %p4090_p6 }
0x19a4   : > { %3916 = dma.done.wait (!%p3616_p2), %s3099_s23, 256  }
0x19a5   : > { %3918 = vsyncadd (!%p3616_p2), %s3099_s23, 4294967040  ;;  %s4856_s21 = sld [smem:[#allocation8_spill]]  ;;  %s4857_s20 = sld [smem:[#allocation6_spill]] }
0x19a6   : > { %s4858_s28 = sld [smem:[#allocation9_spill]]  ;;  %s4859_s0 = smov %s3925_s30 }
0x19ab   : > { %p29_p3 = scmp.ge.s32.totalorder %s4856_s21, 4   ;;  %s4860_s30 = smov %s4857_s20 }
0x19ac   : > { %s4861_s20 = smov %s4858_s28 }
0x19ad   :  { %31 = sbr.rel (!%p29_p3) target bundleno = 9 (0x9), region = 143 }
0x19b4   :  { %3104 = vsyncpa [#allocation3], 1 }
0x19b5   :  { %3106 = vsyncpa [#allocation3 + $0x1], 1 }

</bundles_post_ra>
